<compile_context>
chip_gen: v5e
topology: v5e:2x2
jax: 0.10.0
libtpu: 0.0.40
codegen_flags: <defaults>
</compile_context>

<pallas_src>
import functools

import jax
import jax.numpy as jnp
from jax import lax
from jax.experimental import pallas as pl
from jax.experimental.pallas import tpu as pltpu


def _conv_bn_relu_pool_kernel(x_ref, w_ref, b_ref, o_ref, *,
                              kh, kw, stride, pool, h_pool, w_pool):
    """One image per grid step.

    x_ref: (1, q*q, H_half, W_half, C_in)  bf16, space-to-depth input planes,
           q = stride*pool, plane index = ph*q + pw,
           plane[ph*q+pw][i, j, c] == x_pad[i*q+ph, j*q+pw, c].
    w_ref: (kh*kw, C_in, C_pad)            bf16, BN-folded conv weights.
    b_ref: (1, C_pad)                      f32,  BN-folded bias.
    o_ref: (1, H_pool*W_pool, C_pad)       pooled output, channels on lanes.
    """
    q = stride * pool
    hwp = h_pool * w_pool
    c_pad = o_ref.shape[-1]

    x = x_ref[0]       # (q*q, H_half, W_half, C_in) bf16 — already in VMEM
    w = w_ref[...]     # (kh*kw, C_in, C_pad)        bf16

    pooled = None
    # One f32 accumulator per pool offset (dy, dx); pooling is then a plain
    # element-wise max — no strided slices, no relayout in the epilogue.
    for dy in range(pool):
        for dx in range(pool):
            acc = jnp.zeros((hwp, c_pad), jnp.float32)
            for ky in range(kh):
                for kx in range(kw):
                    rh = stride * dy + ky
                    rw = stride * dx + kx
                    plane = (rh % q) * q + (rw % q)
                    a, b = rh // q, rw // q
                    # Contiguous static slice of the space-to-depth plane;
                    # reshape keeps the (lane) channel dim -> essentially free.
                    patch = x[plane, a:a + h_pool, b:b + w_pool, :]
                    patch = patch.reshape(hwp, patch.shape[-1])
                    acc = acc + jnp.dot(patch, w[ky * kw + kx],
                                        preferred_element_type=jnp.float32)
            pooled = acc if pooled is None else jnp.maximum(pooled, acc)

    # Bias-add and ReLU commute with max-pool, so apply them once at the end.
    out = jnp.maximum(pooled + b_ref[...], 0.0)
    o_ref[0] = out.astype(o_ref.dtype)


def conv_bn_relu_pool(x, conv_w, conv_b, gamma, beta, running_mean, running_var,
                      *, stride, padding, pool, eps=1e-5):
    """Pallas equivalent of ConvBNBlock.forward (eval-mode BatchNorm).

    Pooling uses floor mode (matches nn.MaxPool2d defaults): output rows/cols
    beyond pool*floor(H_out/pool) are dropped.
    """
    n, c_in, h, w = x.shape
    c_out, _, kh, kw = conv_w.shape
    q = stride * pool

    h_out = (h + 2 * padding - kh) // stride + 1
    w_out = (w + 2 * padding - kw) // stride + 1
    h_pool, w_pool = h_out // pool, w_out // pool
    hwp = h_pool * w_pool

    # ---- Fold inference-mode BatchNorm into conv weights / bias ------------
    scale = gamma / jnp.sqrt(running_var + eps)
    c_pad = ((c_out + 127) // 128) * 128            # lane-dense output channels
    w_f = conv_w * scale[:, None, None, None]       # (C_out, C_in, kh, kw)
    w_f = w_f.transpose(2, 3, 1, 0).reshape(kh * kw, c_in, c_out)
    w_f = jnp.pad(w_f, ((0, 0), (0, 0), (0, c_pad - c_out))).astype(jnp.bfloat16)
    b_f = ((conv_b - running_mean) * scale + beta).astype(jnp.float32)
    b_f = jnp.pad(b_f, (0, c_pad - c_out)).reshape(1, c_pad)

    # ---- Layout-only space-to-depth of the padded NHWC input (no blow-up) --
    h_need = stride * (pool * h_pool - 1) + kh
    w_need = stride * (pool * w_pool - 1) + kw
    h_tot = -(-max(h + 2 * padding, h_need) // q) * q
    w_tot = -(-max(w + 2 * padding, w_need) // q) * q
    h_half, w_half = h_tot // q, w_tot // q

    x_nhwc = x.transpose(0, 2, 3, 1)
    xp = jnp.pad(x_nhwc, ((0, 0),
                          (padding, h_tot - h - padding),
                          (padding, w_tot - w - padding),
                          (0, 0)))
    x_s2d = xp.reshape(n, h_half, q, w_half, q, c_in)
    x_s2d = x_s2d.transpose(0, 2, 4, 1, 3, 5).reshape(n, q * q, h_half, w_half, c_in)
    x_s2d = x_s2d.astype(jnp.bfloat16)               # bf16 LHS stream (2x less HBM)

    kernel = functools.partial(_conv_bn_relu_pool_kernel, kh=kh, kw=kw,
                               stride=stride, pool=pool,
                               h_pool=h_pool, w_pool=w_pool)

    flops = 2 * n * (pool * pool * hwp) * (kh * kw * c_in) * c_pad
    bytes_accessed = (x_s2d.size * 2 + w_f.size * 2 + b_f.size * 4
                      + n * hwp * c_pad * x.dtype.itemsize)

    # NOTE: at production H/W/C the pooled-row (M) axis would be tiled into
    # 256-512 row blocks and C_in (K) over a trailing 'arbitrary' grid axis
    # with an f32 VMEM accumulator; at these shapes one image fits trivially.
    out = pl.pallas_call(
        kernel,
        out_shape=jax.ShapeDtypeStruct((n, hwp, c_pad), x.dtype),
        grid=(n,),
        in_specs=[
            pl.BlockSpec((1, q * q, h_half, w_half, c_in),
                         lambda b: (b, 0, 0, 0, 0)),
            pl.BlockSpec((kh * kw, c_in, c_pad), lambda b: (0, 0, 0)),
            pl.BlockSpec((1, c_pad), lambda b: (0, 0)),
        ],
        out_specs=pl.BlockSpec((1, hwp, c_pad), lambda b: (b, 0, 0)),
        compiler_params=pltpu.CompilerParams(
            dimension_semantics=("parallel",)),
        cost_estimate=pl.CostEstimate(flops=flops, transcendentals=0,
                                      bytes_accessed=bytes_accessed),
    )(x_s2d, w_f, b_f)

    # Free layout plumbing back to PyTorch's NCHW (and drop padded channels).
    out = out[:, :, :c_out].reshape(n, h_pool, w_pool, c_out)
    return out.transpose(0, 3, 1, 2)


if __name__ == "__main__":
    key = jax.random.PRNGKey(0)
    ks = jax.random.split(key, 7)

    N, C_IN, C_OUT, H, W = 2, 4, 8, 16, 16
    KSIZE, PAD, STRIDE, POOL = 3, 1, 1, 2
    EPS = 1e-5

    x = jax.random.normal(ks[0], (N, C_IN, H, W), dtype=jnp.float32)
    conv_w = jax.random.normal(ks[1], (C_OUT, C_IN, KSIZE, KSIZE), jnp.float32) * 0.1
    conv_b = jax.random.normal(ks[2], (C_OUT,), jnp.float32) * 0.1
    gamma = jax.random.uniform(ks[3], (C_OUT,), jnp.float32, 0.5, 1.5)
    beta = jax.random.normal(ks[4], (C_OUT,), jnp.float32) * 0.1
    r_mean = jax.random.normal(ks[5], (C_OUT,), jnp.float32) * 0.1
    r_var = jax.random.uniform(ks[6], (C_OUT,), jnp.float32, 0.5, 1.5)

    y = conv_bn_relu_pool(x, conv_w, conv_b, gamma, beta, r_mean, r_var,
                          stride=STRIDE, padding=PAD, pool=POOL, eps=EPS)
    jax.block_until_ready(y)

    # Pure-JAX reference with the same numerics as the kernel
    # (bf16 operands, f32 accumulation), eval-mode BatchNorm folded in.
    s = gamma / jnp.sqrt(r_var + EPS)
    w_ref = (conv_w * s[:, None, None, None]).astype(jnp.bfloat16)
    b_ref = (conv_b - r_mean) * s + beta
    ref = lax.conv_general_dilated(
        x.astype(jnp.bfloat16), w_ref, window_strides=(STRIDE, STRIDE),
        padding=((PAD, PAD), (PAD, PAD)),
        dimension_numbers=("NCHW", "OIHW", "NCHW"),
        preferred_element_type=jnp.float32)
    ref = ref + b_ref[None, :, None, None].astype(jnp.float32)
    ref = jnp.maximum(ref, 0.0)
    ho, wo = ref.shape[2], ref.shape[3]
    hp, wp = ho // POOL, wo // POOL
    ref = ref[:, :, :hp * POOL, :wp * POOL]
    ref = ref.reshape(N, C_OUT, hp, POOL, wp, POOL).max(axis=(3, 5))

    assert y.shape == ref.shape == (N, C_OUT, hp, wp)
    assert y.dtype == x.dtype
    max_err = float(jnp.max(jnp.abs(y - ref)))
    assert max_err < 1e-2, max_err
    print("KERNEL_OK")
</pallas_src>

<mosaic_0001>
module attributes {stable_mosaic.version = 11 : i64} {
  func.func @_conv_bn_relu_pool_kernel(%arg0: i32, %arg1: memref<1x4x9x9x4xbf16, #tpu.memory_space<vmem>>, %arg2: memref<9x4x128xbf16, #tpu.memory_space<vmem>>, %arg3: memref<1x128xf32, #tpu.memory_space<vmem>>, %arg4: memref<1x64x128xf32, #tpu.memory_space<vmem>>) attributes {dimension_semantics = [#tpu.dimension_semantics<parallel>], iteration_bounds = array<i64: 2>, scalar_prefetch = 0 : i64, scratch_operands = 0 : i64, tpu.core_type = #tpu.core_type<tc>, window_params = [{transform_indices = @transform_0, window_bounds = array<i64: 1, 4, 9, 9, 4>}, {pipeline_mode = #tpu.pipeline_mode<synchronous>, transform_indices = @transform_1, window_bounds = array<i64: 9, 4, 128>}, {pipeline_mode = #tpu.pipeline_mode<synchronous>, transform_indices = @transform_2, window_bounds = array<i64: 1, 128>}, {transform_indices = @transform_3, window_bounds = array<i64: 1, 64, 128>}]} {
    %c0 = arith.constant 0 : index
    %c0_0 = arith.constant 0 : index
    %c0_1 = arith.constant 0 : index
    %c0_2 = arith.constant 0 : index
    %c0_3 = arith.constant 0 : index
    %0 = vector.load %arg1[%c0, %c0_0, %c0_1, %c0_2, %c0_3] : memref<1x4x9x9x4xbf16, #tpu.memory_space<vmem>>, vector<1x4x9x9x4xbf16>
    %1 = vector.shape_cast %0 : vector<1x4x9x9x4xbf16> to vector<4x9x9x4xbf16>
    %c0_4 = arith.constant 0 : index
    %c0_5 = arith.constant 0 : index
    %c0_6 = arith.constant 0 : index
    %2 = vector.load %arg2[%c0_4, %c0_5, %c0_6] : memref<9x4x128xbf16, #tpu.memory_space<vmem>>, vector<9x4x128xbf16>
    %cst = arith.constant 0.000000e+00 : f32
    %3 = vector.broadcast %cst : f32 to vector<64x128xf32>
    %4 = vector.extract_strided_slice %1 {offsets = [0, 0, 0, 0], sizes = [1, 8, 8, 4], strides = [1, 1, 1, 1]} : vector<4x9x9x4xbf16> to vector<1x8x8x4xbf16>
    %5 = vector.shape_cast %4 : vector<1x8x8x4xbf16> to vector<8x8x4xbf16>
    %6 = vector.shape_cast %5 : vector<8x8x4xbf16> to vector<64x4xbf16>
    %7 = vector.extract_strided_slice %2 {offsets = [0, 0, 0], sizes = [1, 4, 128], strides = [1, 1, 1]} : vector<9x4x128xbf16> to vector<1x4x128xbf16>
    %8 = vector.shape_cast %7 : vector<1x4x128xbf16> to vector<4x128xbf16>
    %cst_7 = arith.constant dense<0.000000e+00> : vector<64x128xf32>
    %9 = tpu.matmul %6, %8, %cst_7 {dimension_numbers = #tpu.dot_dimension_numbers<[1], [0], [0], [1], [0, 0, 1, 1], [], []>} : vector<64x4xbf16>, vector<4x128xbf16>, vector<64x128xf32> -> vector<64x128xf32>
    %10 = arith.addf %3, %9 : vector<64x128xf32>
    %11 = vector.extract_strided_slice %1 {offsets = [1, 0, 0, 0], sizes = [1, 8, 8, 4], strides = [1, 1, 1, 1]} : vector<4x9x9x4xbf16> to vector<1x8x8x4xbf16>
    %12 = vector.shape_cast %11 : vector<1x8x8x4xbf16> to vector<8x8x4xbf16>
    %13 = vector.shape_cast %12 : vector<8x8x4xbf16> to vector<64x4xbf16>
    %14 = vector.extract_strided_slice %2 {offsets = [1, 0, 0], sizes = [1, 4, 128], strides = [1, 1, 1]} : vector<9x4x128xbf16> to vector<1x4x128xbf16>
    %15 = vector.shape_cast %14 : vector<1x4x128xbf16> to vector<4x128xbf16>
    %cst_8 = arith.constant dense<0.000000e+00> : vector<64x128xf32>
    %16 = tpu.matmul %13, %15, %cst_8 {dimension_numbers = #tpu.dot_dimension_numbers<[1], [0], [0], [1], [0, 0, 1, 1], [], []>} : vector<64x4xbf16>, vector<4x128xbf16>, vector<64x128xf32> -> vector<64x128xf32>
    %17 = arith.addf %10, %16 : vector<64x128xf32>
    %18 = vector.extract_strided_slice %1 {offsets = [0, 0, 1, 0], sizes = [1, 8, 8, 4], strides = [1, 1, 1, 1]} : vector<4x9x9x4xbf16> to vector<1x8x8x4xbf16>
    %19 = vector.shape_cast %18 : vector<1x8x8x4xbf16> to vector<8x8x4xbf16>
    %20 = vector.shape_cast %19 : vector<8x8x4xbf16> to vector<64x4xbf16>
    %21 = vector.extract_strided_slice %2 {offsets = [2, 0, 0], sizes = [1, 4, 128], strides = [1, 1, 1]} : vector<9x4x128xbf16> to vector<1x4x128xbf16>
    %22 = vector.shape_cast %21 : vector<1x4x128xbf16> to vector<4x128xbf16>
    %cst_9 = arith.constant dense<0.000000e+00> : vector<64x128xf32>
    %23 = tpu.matmul %20, %22, %cst_9 {dimension_numbers = #tpu.dot_dimension_numbers<[1], [0], [0], [1], [0, 0, 1, 1], [], []>} : vector<64x4xbf16>, vector<4x128xbf16>, vector<64x128xf32> -> vector<64x128xf32>
    %24 = arith.addf %17, %23 : vector<64x128xf32>
    %25 = vector.extract_strided_slice %1 {offsets = [2, 0, 0, 0], sizes = [1, 8, 8, 4], strides = [1, 1, 1, 1]} : vector<4x9x9x4xbf16> to vector<1x8x8x4xbf16>
    %26 = vector.shape_cast %25 : vector<1x8x8x4xbf16> to vector<8x8x4xbf16>
    %27 = vector.shape_cast %26 : vector<8x8x4xbf16> to vector<64x4xbf16>
    %28 = vector.extract_strided_slice %2 {offsets = [3, 0, 0], sizes = [1, 4, 128], strides = [1, 1, 1]} : vector<9x4x128xbf16> to vector<1x4x128xbf16>
    %29 = vector.shape_cast %28 : vector<1x4x128xbf16> to vector<4x128xbf16>
    %cst_10 = arith.constant dense<0.000000e+00> : vector<64x128xf32>
    %30 = tpu.matmul %27, %29, %cst_10 {dimension_numbers = #tpu.dot_dimension_numbers<[1], [0], [0], [1], [0, 0, 1, 1], [], []>} : vector<64x4xbf16>, vector<4x128xbf16>, vector<64x128xf32> -> vector<64x128xf32>
    %31 = arith.addf %24, %30 : vector<64x128xf32>
    %32 = vector.extract_strided_slice %1 {offsets = [3, 0, 0, 0], sizes = [1, 8, 8, 4], strides = [1, 1, 1, 1]} : vector<4x9x9x4xbf16> to vector<1x8x8x4xbf16>
    %33 = vector.shape_cast %32 : vector<1x8x8x4xbf16> to vector<8x8x4xbf16>
    %34 = vector.shape_cast %33 : vector<8x8x4xbf16> to vector<64x4xbf16>
    %35 = vector.extract_strided_slice %2 {offsets = [4, 0, 0], sizes = [1, 4, 128], strides = [1, 1, 1]} : vector<9x4x128xbf16> to vector<1x4x128xbf16>
    %36 = vector.shape_cast %35 : vector<1x4x128xbf16> to vector<4x128xbf16>
    %cst_11 = arith.constant dense<0.000000e+00> : vector<64x128xf32>
    %37 = tpu.matmul %34, %36, %cst_11 {dimension_numbers = #tpu.dot_dimension_numbers<[1], [0], [0], [1], [0, 0, 1, 1], [], []>} : vector<64x4xbf16>, vector<4x128xbf16>, vector<64x128xf32> -> vector<64x128xf32>
    %38 = arith.addf %31, %37 : vector<64x128xf32>
    %39 = vector.extract_strided_slice %1 {offsets = [2, 0, 1, 0], sizes = [1, 8, 8, 4], strides = [1, 1, 1, 1]} : vector<4x9x9x4xbf16> to vector<1x8x8x4xbf16>
    %40 = vector.shape_cast %39 : vector<1x8x8x4xbf16> to vector<8x8x4xbf16>
    %41 = vector.shape_cast %40 : vector<8x8x4xbf16> to vector<64x4xbf16>
    %42 = vector.extract_strided_slice %2 {offsets = [5, 0, 0], sizes = [1, 4, 128], strides = [1, 1, 1]} : vector<9x4x128xbf16> to vector<1x4x128xbf16>
    %43 = vector.shape_cast %42 : vector<1x4x128xbf16> to vector<4x128xbf16>
    %cst_12 = arith.constant dense<0.000000e+00> : vector<64x128xf32>
    %44 = tpu.matmul %41, %43, %cst_12 {dimension_numbers = #tpu.dot_dimension_numbers<[1], [0], [0], [1], [0, 0, 1, 1], [], []>} : vector<64x4xbf16>, vector<4x128xbf16>, vector<64x128xf32> -> vector<64x128xf32>
    %45 = arith.addf %38, %44 : vector<64x128xf32>
    %46 = vector.extract_strided_slice %1 {offsets = [0, 1, 0, 0], sizes = [1, 8, 8, 4], strides = [1, 1, 1, 1]} : vector<4x9x9x4xbf16> to vector<1x8x8x4xbf16>
    %47 = vector.shape_cast %46 : vector<1x8x8x4xbf16> to vector<8x8x4xbf16>
    %48 = vector.shape_cast %47 : vector<8x8x4xbf16> to vector<64x4xbf16>
    %49 = vector.extract_strided_slice %2 {offsets = [6, 0, 0], sizes = [1, 4, 128], strides = [1, 1, 1]} : vector<9x4x128xbf16> to vector<1x4x128xbf16>
    %50 = vector.shape_cast %49 : vector<1x4x128xbf16> to vector<4x128xbf16>
    %cst_13 = arith.constant dense<0.000000e+00> : vector<64x128xf32>
    %51 = tpu.matmul %48, %50, %cst_13 {dimension_numbers = #tpu.dot_dimension_numbers<[1], [0], [0], [1], [0, 0, 1, 1], [], []>} : vector<64x4xbf16>, vector<4x128xbf16>, vector<64x128xf32> -> vector<64x128xf32>
    %52 = arith.addf %45, %51 : vector<64x128xf32>
    %53 = vector.extract_strided_slice %1 {offsets = [1, 1, 0, 0], sizes = [1, 8, 8, 4], strides = [1, 1, 1, 1]} : vector<4x9x9x4xbf16> to vector<1x8x8x4xbf16>
    %54 = vector.shape_cast %53 : vector<1x8x8x4xbf16> to vector<8x8x4xbf16>
    %55 = vector.shape_cast %54 : vector<8x8x4xbf16> to vector<64x4xbf16>
    %56 = vector.extract_strided_slice %2 {offsets = [7, 0, 0], sizes = [1, 4, 128], strides = [1, 1, 1]} : vector<9x4x128xbf16> to vector<1x4x128xbf16>
    %57 = vector.shape_cast %56 : vector<1x4x128xbf16> to vector<4x128xbf16>
    %cst_14 = arith.constant dense<0.000000e+00> : vector<64x128xf32>
    %58 = tpu.matmul %55, %57, %cst_14 {dimension_numbers = #tpu.dot_dimension_numbers<[1], [0], [0], [1], [0, 0, 1, 1], [], []>} : vector<64x4xbf16>, vector<4x128xbf16>, vector<64x128xf32> -> vector<64x128xf32>
    %59 = arith.addf %52, %58 : vector<64x128xf32>
    %60 = vector.extract_strided_slice %1 {offsets = [0, 1, 1, 0], sizes = [1, 8, 8, 4], strides = [1, 1, 1, 1]} : vector<4x9x9x4xbf16> to vector<1x8x8x4xbf16>
    %61 = vector.shape_cast %60 : vector<1x8x8x4xbf16> to vector<8x8x4xbf16>
    %62 = vector.shape_cast %61 : vector<8x8x4xbf16> to vector<64x4xbf16>
    %63 = vector.extract_strided_slice %2 {offsets = [8, 0, 0], sizes = [1, 4, 128], strides = [1, 1, 1]} : vector<9x4x128xbf16> to vector<1x4x128xbf16>
    %64 = vector.shape_cast %63 : vector<1x4x128xbf16> to vector<4x128xbf16>
    %cst_15 = arith.constant dense<0.000000e+00> : vector<64x128xf32>
    %65 = tpu.matmul %62, %64, %cst_15 {dimension_numbers = #tpu.dot_dimension_numbers<[1], [0], [0], [1], [0, 0, 1, 1], [], []>} : vector<64x4xbf16>, vector<4x128xbf16>, vector<64x128xf32> -> vector<64x128xf32>
    %66 = arith.addf %59, %65 : vector<64x128xf32>
    %cst_16 = arith.constant 0.000000e+00 : f32
    %67 = vector.broadcast %cst_16 : f32 to vector<64x128xf32>
    %68 = vector.extract_strided_slice %1 {offsets = [1, 0, 0, 0], sizes = [1, 8, 8, 4], strides = [1, 1, 1, 1]} : vector<4x9x9x4xbf16> to vector<1x8x8x4xbf16>
    %69 = vector.shape_cast %68 : vector<1x8x8x4xbf16> to vector<8x8x4xbf16>
    %70 = vector.shape_cast %69 : vector<8x8x4xbf16> to vector<64x4xbf16>
    %71 = vector.extract_strided_slice %2 {offsets = [0, 0, 0], sizes = [1, 4, 128], strides = [1, 1, 1]} : vector<9x4x128xbf16> to vector<1x4x128xbf16>
    %72 = vector.shape_cast %71 : vector<1x4x128xbf16> to vector<4x128xbf16>
    %cst_17 = arith.constant dense<0.000000e+00> : vector<64x128xf32>
    %73 = tpu.matmul %70, %72, %cst_17 {dimension_numbers = #tpu.dot_dimension_numbers<[1], [0], [0], [1], [0, 0, 1, 1], [], []>} : vector<64x4xbf16>, vector<4x128xbf16>, vector<64x128xf32> -> vector<64x128xf32>
    %74 = arith.addf %67, %73 : vector<64x128xf32>
    %75 = vector.extract_strided_slice %1 {offsets = [0, 0, 1, 0], sizes = [1, 8, 8, 4], strides = [1, 1, 1, 1]} : vector<4x9x9x4xbf16> to vector<1x8x8x4xbf16>
    %76 = vector.shape_cast %75 : vector<1x8x8x4xbf16> to vector<8x8x4xbf16>
    %77 = vector.shape_cast %76 : vector<8x8x4xbf16> to vector<64x4xbf16>
    %78 = vector.extract_strided_slice %2 {offsets = [1, 0, 0], sizes = [1, 4, 128], strides = [1, 1, 1]} : vector<9x4x128xbf16> to vector<1x4x128xbf16>
    %79 = vector.shape_cast %78 : vector<1x4x128xbf16> to vector<4x128xbf16>
    %cst_18 = arith.constant dense<0.000000e+00> : vector<64x128xf32>
    %80 = tpu.matmul %77, %79, %cst_18 {dimension_numbers = #tpu.dot_dimension_numbers<[1], [0], [0], [1], [0, 0, 1, 1], [], []>} : vector<64x4xbf16>, vector<4x128xbf16>, vector<64x128xf32> -> vector<64x128xf32>
    %81 = arith.addf %74, %80 : vector<64x128xf32>
    %82 = vector.extract_strided_slice %1 {offsets = [1, 0, 1, 0], sizes = [1, 8, 8, 4], strides = [1, 1, 1, 1]} : vector<4x9x9x4xbf16> to vector<1x8x8x4xbf16>
    %83 = vector.shape_cast %82 : vector<1x8x8x4xbf16> to vector<8x8x4xbf16>
    %84 = vector.shape_cast %83 : vector<8x8x4xbf16> to vector<64x4xbf16>
    %85 = vector.extract_strided_slice %2 {offsets = [2, 0, 0], sizes = [1, 4, 128], strides = [1, 1, 1]} : vector<9x4x128xbf16> to vector<1x4x128xbf16>
    %86 = vector.shape_cast %85 : vector<1x4x128xbf16> to vector<4x128xbf16>
    %cst_19 = arith.constant dense<0.000000e+00> : vector<64x128xf32>
    %87 = tpu.matmul %84, %86, %cst_19 {dimension_numbers = #tpu.dot_dimension_numbers<[1], [0], [0], [1], [0, 0, 1, 1], [], []>} : vector<64x4xbf16>, vector<4x128xbf16>, vector<64x128xf32> -> vector<64x128xf32>
    %88 = arith.addf %81, %87 : vector<64x128xf32>
    %89 = vector.extract_strided_slice %1 {offsets = [3, 0, 0, 0], sizes = [1, 8, 8, 4], strides = [1, 1, 1, 1]} : vector<4x9x9x4xbf16> to vector<1x8x8x4xbf16>
    %90 = vector.shape_cast %89 : vector<1x8x8x4xbf16> to vector<8x8x4xbf16>
    %91 = vector.shape_cast %90 : vector<8x8x4xbf16> to vector<64x4xbf16>
    %92 = vector.extract_strided_slice %2 {offsets = [3, 0, 0], sizes = [1, 4, 128], strides = [1, 1, 1]} : vector<9x4x128xbf16> to vector<1x4x128xbf16>
    %93 = vector.shape_cast %92 : vector<1x4x128xbf16> to vector<4x128xbf16>
    %cst_20 = arith.constant dense<0.000000e+00> : vector<64x128xf32>
    %94 = tpu.matmul %91, %93, %cst_20 {dimension_numbers = #tpu.dot_dimension_numbers<[1], [0], [0], [1], [0, 0, 1, 1], [], []>} : vector<64x4xbf16>, vector<4x128xbf16>, vector<64x128xf32> -> vector<64x128xf32>
    %95 = arith.addf %88, %94 : vector<64x128xf32>
    %96 = vector.extract_strided_slice %1 {offsets = [2, 0, 1, 0], sizes = [1, 8, 8, 4], strides = [1, 1, 1, 1]} : vector<4x9x9x4xbf16> to vector<1x8x8x4xbf16>
    %97 = vector.shape_cast %96 : vector<1x8x8x4xbf16> to vector<8x8x4xbf16>
    %98 = vector.shape_cast %97 : vector<8x8x4xbf16> to vector<64x4xbf16>
    %99 = vector.extract_strided_slice %2 {offsets = [4, 0, 0], sizes = [1, 4, 128], strides = [1, 1, 1]} : vector<9x4x128xbf16> to vector<1x4x128xbf16>
    %100 = vector.shape_cast %99 : vector<1x4x128xbf16> to vector<4x128xbf16>
    %cst_21 = arith.constant dense<0.000000e+00> : vector<64x128xf32>
    %101 = tpu.matmul %98, %100, %cst_21 {dimension_numbers = #tpu.dot_dimension_numbers<[1], [0], [0], [1], [0, 0, 1, 1], [], []>} : vector<64x4xbf16>, vector<4x128xbf16>, vector<64x128xf32> -> vector<64x128xf32>
    %102 = arith.addf %95, %101 : vector<64x128xf32>
    %103 = vector.extract_strided_slice %1 {offsets = [3, 0, 1, 0], sizes = [1, 8, 8, 4], strides = [1, 1, 1, 1]} : vector<4x9x9x4xbf16> to vector<1x8x8x4xbf16>
    %104 = vector.shape_cast %103 : vector<1x8x8x4xbf16> to vector<8x8x4xbf16>
    %105 = vector.shape_cast %104 : vector<8x8x4xbf16> to vector<64x4xbf16>
    %106 = vector.extract_strided_slice %2 {offsets = [5, 0, 0], sizes = [1, 4, 128], strides = [1, 1, 1]} : vector<9x4x128xbf16> to vector<1x4x128xbf16>
    %107 = vector.shape_cast %106 : vector<1x4x128xbf16> to vector<4x128xbf16>
    %cst_22 = arith.constant dense<0.000000e+00> : vector<64x128xf32>
    %108 = tpu.matmul %105, %107, %cst_22 {dimension_numbers = #tpu.dot_dimension_numbers<[1], [0], [0], [1], [0, 0, 1, 1], [], []>} : vector<64x4xbf16>, vector<4x128xbf16>, vector<64x128xf32> -> vector<64x128xf32>
    %109 = arith.addf %102, %108 : vector<64x128xf32>
    %110 = vector.extract_strided_slice %1 {offsets = [1, 1, 0, 0], sizes = [1, 8, 8, 4], strides = [1, 1, 1, 1]} : vector<4x9x9x4xbf16> to vector<1x8x8x4xbf16>
    %111 = vector.shape_cast %110 : vector<1x8x8x4xbf16> to vector<8x8x4xbf16>
    %112 = vector.shape_cast %111 : vector<8x8x4xbf16> to vector<64x4xbf16>
    %113 = vector.extract_strided_slice %2 {offsets = [6, 0, 0], sizes = [1, 4, 128], strides = [1, 1, 1]} : vector<9x4x128xbf16> to vector<1x4x128xbf16>
    %114 = vector.shape_cast %113 : vector<1x4x128xbf16> to vector<4x128xbf16>
    %cst_23 = arith.constant dense<0.000000e+00> : vector<64x128xf32>
    %115 = tpu.matmul %112, %114, %cst_23 {dimension_numbers = #tpu.dot_dimension_numbers<[1], [0], [0], [1], [0, 0, 1, 1], [], []>} : vector<64x4xbf16>, vector<4x128xbf16>, vector<64x128xf32> -> vector<64x128xf32>
    %116 = arith.addf %109, %115 : vector<64x128xf32>
    %117 = vector.extract_strided_slice %1 {offsets = [0, 1, 1, 0], sizes = [1, 8, 8, 4], strides = [1, 1, 1, 1]} : vector<4x9x9x4xbf16> to vector<1x8x8x4xbf16>
    %118 = vector.shape_cast %117 : vector<1x8x8x4xbf16> to vector<8x8x4xbf16>
    %119 = vector.shape_cast %118 : vector<8x8x4xbf16> to vector<64x4xbf16>
    %120 = vector.extract_strided_slice %2 {offsets = [7, 0, 0], sizes = [1, 4, 128], strides = [1, 1, 1]} : vector<9x4x128xbf16> to vector<1x4x128xbf16>
    %121 = vector.shape_cast %120 : vector<1x4x128xbf16> to vector<4x128xbf16>
    %cst_24 = arith.constant dense<0.000000e+00> : vector<64x128xf32>
    %122 = tpu.matmul %119, %121, %cst_24 {dimension_numbers = #tpu.dot_dimension_numbers<[1], [0], [0], [1], [0, 0, 1, 1], [], []>} : vector<64x4xbf16>, vector<4x128xbf16>, vector<64x128xf32> -> vector<64x128xf32>
    %123 = arith.addf %116, %122 : vector<64x128xf32>
    %124 = vector.extract_strided_slice %1 {offsets = [1, 1, 1, 0], sizes = [1, 8, 8, 4], strides = [1, 1, 1, 1]} : vector<4x9x9x4xbf16> to vector<1x8x8x4xbf16>
    %125 = vector.shape_cast %124 : vector<1x8x8x4xbf16> to vector<8x8x4xbf16>
    %126 = vector.shape_cast %125 : vector<8x8x4xbf16> to vector<64x4xbf16>
    %127 = vector.extract_strided_slice %2 {offsets = [8, 0, 0], sizes = [1, 4, 128], strides = [1, 1, 1]} : vector<9x4x128xbf16> to vector<1x4x128xbf16>
    %128 = vector.shape_cast %127 : vector<1x4x128xbf16> to vector<4x128xbf16>
    %cst_25 = arith.constant dense<0.000000e+00> : vector<64x128xf32>
    %129 = tpu.matmul %126, %128, %cst_25 {dimension_numbers = #tpu.dot_dimension_numbers<[1], [0], [0], [1], [0, 0, 1, 1], [], []>} : vector<64x4xbf16>, vector<4x128xbf16>, vector<64x128xf32> -> vector<64x128xf32>
    %130 = arith.addf %123, %129 : vector<64x128xf32>
    %131 = arith.maximumf %66, %130 : vector<64x128xf32>
    %cst_26 = arith.constant 0.000000e+00 : f32
    %132 = vector.broadcast %cst_26 : f32 to vector<64x128xf32>
    %133 = vector.extract_strided_slice %1 {offsets = [2, 0, 0, 0], sizes = [1, 8, 8, 4], strides = [1, 1, 1, 1]} : vector<4x9x9x4xbf16> to vector<1x8x8x4xbf16>
    %134 = vector.shape_cast %133 : vector<1x8x8x4xbf16> to vector<8x8x4xbf16>
    %135 = vector.shape_cast %134 : vector<8x8x4xbf16> to vector<64x4xbf16>
    %136 = vector.extract_strided_slice %2 {offsets = [0, 0, 0], sizes = [1, 4, 128], strides = [1, 1, 1]} : vector<9x4x128xbf16> to vector<1x4x128xbf16>
    %137 = vector.shape_cast %136 : vector<1x4x128xbf16> to vector<4x128xbf16>
    %cst_27 = arith.constant dense<0.000000e+00> : vector<64x128xf32>
    %138 = tpu.matmul %135, %137, %cst_27 {dimension_numbers = #tpu.dot_dimension_numbers<[1], [0], [0], [1], [0, 0, 1, 1], [], []>} : vector<64x4xbf16>, vector<4x128xbf16>, vector<64x128xf32> -> vector<64x128xf32>
    %139 = arith.addf %132, %138 : vector<64x128xf32>
    %140 = vector.extract_strided_slice %1 {offsets = [3, 0, 0, 0], sizes = [1, 8, 8, 4], strides = [1, 1, 1, 1]} : vector<4x9x9x4xbf16> to vector<1x8x8x4xbf16>
    %141 = vector.shape_cast %140 : vector<1x8x8x4xbf16> to vector<8x8x4xbf16>
    %142 = vector.shape_cast %141 : vector<8x8x4xbf16> to vector<64x4xbf16>
    %143 = vector.extract_strided_slice %2 {offsets = [1, 0, 0], sizes = [1, 4, 128], strides = [1, 1, 1]} : vector<9x4x128xbf16> to vector<1x4x128xbf16>
    %144 = vector.shape_cast %143 : vector<1x4x128xbf16> to vector<4x128xbf16>
    %cst_28 = arith.constant dense<0.000000e+00> : vector<64x128xf32>
    %145 = tpu.matmul %142, %144, %cst_28 {dimension_numbers = #tpu.dot_dimension_numbers<[1], [0], [0], [1], [0, 0, 1, 1], [], []>} : vector<64x4xbf16>, vector<4x128xbf16>, vector<64x128xf32> -> vector<64x128xf32>
    %146 = arith.addf %139, %145 : vector<64x128xf32>
    %147 = vector.extract_strided_slice %1 {offsets = [2, 0, 1, 0], sizes = [1, 8, 8, 4], strides = [1, 1, 1, 1]} : vector<4x9x9x4xbf16> to vector<1x8x8x4xbf16>
    %148 = vector.shape_cast %147 : vector<1x8x8x4xbf16> to vector<8x8x4xbf16>
    %149 = vector.shape_cast %148 : vector<8x8x4xbf16> to vector<64x4xbf16>
    %150 = vector.extract_strided_slice %2 {offsets = [2, 0, 0], sizes = [1, 4, 128], strides = [1, 1, 1]} : vector<9x4x128xbf16> to vector<1x4x128xbf16>
    %151 = vector.shape_cast %150 : vector<1x4x128xbf16> to vector<4x128xbf16>
    %cst_29 = arith.constant dense<0.000000e+00> : vector<64x128xf32>
    %152 = tpu.matmul %149, %151, %cst_29 {dimension_numbers = #tpu.dot_dimension_numbers<[1], [0], [0], [1], [0, 0, 1, 1], [], []>} : vector<64x4xbf16>, vector<4x128xbf16>, vector<64x128xf32> -> vector<64x128xf32>
    %153 = arith.addf %146, %152 : vector<64x128xf32>
    %154 = vector.extract_strided_slice %1 {offsets = [0, 1, 0, 0], sizes = [1, 8, 8, 4], strides = [1, 1, 1, 1]} : vector<4x9x9x4xbf16> to vector<1x8x8x4xbf16>
    %155 = vector.shape_cast %154 : vector<1x8x8x4xbf16> to vector<8x8x4xbf16>
    %156 = vector.shape_cast %155 : vector<8x8x4xbf16> to vector<64x4xbf16>
    %157 = vector.extract_strided_slice %2 {offsets = [3, 0, 0], sizes = [1, 4, 128], strides = [1, 1, 1]} : vector<9x4x128xbf16> to vector<1x4x128xbf16>
    %158 = vector.shape_cast %157 : vector<1x4x128xbf16> to vector<4x128xbf16>
    %cst_30 = arith.constant dense<0.000000e+00> : vector<64x128xf32>
    %159 = tpu.matmul %156, %158, %cst_30 {dimension_numbers = #tpu.dot_dimension_numbers<[1], [0], [0], [1], [0, 0, 1, 1], [], []>} : vector<64x4xbf16>, vector<4x128xbf16>, vector<64x128xf32> -> vector<64x128xf32>
    %160 = arith.addf %153, %159 : vector<64x128xf32>
    %161 = vector.extract_strided_slice %1 {offsets = [1, 1, 0, 0], sizes = [1, 8, 8, 4], strides = [1, 1, 1, 1]} : vector<4x9x9x4xbf16> to vector<1x8x8x4xbf16>
    %162 = vector.shape_cast %161 : vector<1x8x8x4xbf16> to vector<8x8x4xbf16>
    %163 = vector.shape_cast %162 : vector<8x8x4xbf16> to vector<64x4xbf16>
    %164 = vector.extract_strided_slice %2 {offsets = [4, 0, 0], sizes = [1, 4, 128], strides = [1, 1, 1]} : vector<9x4x128xbf16> to vector<1x4x128xbf16>
    %165 = vector.shape_cast %164 : vector<1x4x128xbf16> to vector<4x128xbf16>
    %cst_31 = arith.constant dense<0.000000e+00> : vector<64x128xf32>
    %166 = tpu.matmul %163, %165, %cst_31 {dimension_numbers = #tpu.dot_dimension_numbers<[1], [0], [0], [1], [0, 0, 1, 1], [], []>} : vector<64x4xbf16>, vector<4x128xbf16>, vector<64x128xf32> -> vector<64x128xf32>
    %167 = arith.addf %160, %166 : vector<64x128xf32>
    %168 = vector.extract_strided_slice %1 {offsets = [0, 1, 1, 0], sizes = [1, 8, 8, 4], strides = [1, 1, 1, 1]} : vector<4x9x9x4xbf16> to vector<1x8x8x4xbf16>
    %169 = vector.shape_cast %168 : vector<1x8x8x4xbf16> to vector<8x8x4xbf16>
    %170 = vector.shape_cast %169 : vector<8x8x4xbf16> to vector<64x4xbf16>
    %171 = vector.extract_strided_slice %2 {offsets = [5, 0, 0], sizes = [1, 4, 128], strides = [1, 1, 1]} : vector<9x4x128xbf16> to vector<1x4x128xbf16>
    %172 = vector.shape_cast %171 : vector<1x4x128xbf16> to vector<4x128xbf16>
    %cst_32 = arith.constant dense<0.000000e+00> : vector<64x128xf32>
    %173 = tpu.matmul %170, %172, %cst_32 {dimension_numbers = #tpu.dot_dimension_numbers<[1], [0], [0], [1], [0, 0, 1, 1], [], []>} : vector<64x4xbf16>, vector<4x128xbf16>, vector<64x128xf32> -> vector<64x128xf32>
    %174 = arith.addf %167, %173 : vector<64x128xf32>
    %175 = vector.extract_strided_slice %1 {offsets = [2, 1, 0, 0], sizes = [1, 8, 8, 4], strides = [1, 1, 1, 1]} : vector<4x9x9x4xbf16> to vector<1x8x8x4xbf16>
    %176 = vector.shape_cast %175 : vector<1x8x8x4xbf16> to vector<8x8x4xbf16>
    %177 = vector.shape_cast %176 : vector<8x8x4xbf16> to vector<64x4xbf16>
    %178 = vector.extract_strided_slice %2 {offsets = [6, 0, 0], sizes = [1, 4, 128], strides = [1, 1, 1]} : vector<9x4x128xbf16> to vector<1x4x128xbf16>
    %179 = vector.shape_cast %178 : vector<1x4x128xbf16> to vector<4x128xbf16>
    %cst_33 = arith.constant dense<0.000000e+00> : vector<64x128xf32>
    %180 = tpu.matmul %177, %179, %cst_33 {dimension_numbers = #tpu.dot_dimension_numbers<[1], [0], [0], [1], [0, 0, 1, 1], [], []>} : vector<64x4xbf16>, vector<4x128xbf16>, vector<64x128xf32> -> vector<64x128xf32>
    %181 = arith.addf %174, %180 : vector<64x128xf32>
    %182 = vector.extract_strided_slice %1 {offsets = [3, 1, 0, 0], sizes = [1, 8, 8, 4], strides = [1, 1, 1, 1]} : vector<4x9x9x4xbf16> to vector<1x8x8x4xbf16>
    %183 = vector.shape_cast %182 : vector<1x8x8x4xbf16> to vector<8x8x4xbf16>
    %184 = vector.shape_cast %183 : vector<8x8x4xbf16> to vector<64x4xbf16>
    %185 = vector.extract_strided_slice %2 {offsets = [7, 0, 0], sizes = [1, 4, 128], strides = [1, 1, 1]} : vector<9x4x128xbf16> to vector<1x4x128xbf16>
    %186 = vector.shape_cast %185 : vector<1x4x128xbf16> to vector<4x128xbf16>
    %cst_34 = arith.constant dense<0.000000e+00> : vector<64x128xf32>
    %187 = tpu.matmul %184, %186, %cst_34 {dimension_numbers = #tpu.dot_dimension_numbers<[1], [0], [0], [1], [0, 0, 1, 1], [], []>} : vector<64x4xbf16>, vector<4x128xbf16>, vector<64x128xf32> -> vector<64x128xf32>
    %188 = arith.addf %181, %187 : vector<64x128xf32>
    %189 = vector.extract_strided_slice %1 {offsets = [2, 1, 1, 0], sizes = [1, 8, 8, 4], strides = [1, 1, 1, 1]} : vector<4x9x9x4xbf16> to vector<1x8x8x4xbf16>
    %190 = vector.shape_cast %189 : vector<1x8x8x4xbf16> to vector<8x8x4xbf16>
    %191 = vector.shape_cast %190 : vector<8x8x4xbf16> to vector<64x4xbf16>
    %192 = vector.extract_strided_slice %2 {offsets = [8, 0, 0], sizes = [1, 4, 128], strides = [1, 1, 1]} : vector<9x4x128xbf16> to vector<1x4x128xbf16>
    %193 = vector.shape_cast %192 : vector<1x4x128xbf16> to vector<4x128xbf16>
    %cst_35 = arith.constant dense<0.000000e+00> : vector<64x128xf32>
    %194 = tpu.matmul %191, %193, %cst_35 {dimension_numbers = #tpu.dot_dimension_numbers<[1], [0], [0], [1], [0, 0, 1, 1], [], []>} : vector<64x4xbf16>, vector<4x128xbf16>, vector<64x128xf32> -> vector<64x128xf32>
    %195 = arith.addf %188, %194 : vector<64x128xf32>
    %196 = arith.maximumf %131, %195 : vector<64x128xf32>
    %cst_36 = arith.constant 0.000000e+00 : f32
    %197 = vector.broadcast %cst_36 : f32 to vector<64x128xf32>
    %198 = vector.extract_strided_slice %1 {offsets = [3, 0, 0, 0], sizes = [1, 8, 8, 4], strides = [1, 1, 1, 1]} : vector<4x9x9x4xbf16> to vector<1x8x8x4xbf16>
    %199 = vector.shape_cast %198 : vector<1x8x8x4xbf16> to vector<8x8x4xbf16>
    %200 = vector.shape_cast %199 : vector<8x8x4xbf16> to vector<64x4xbf16>
    %201 = vector.extract_strided_slice %2 {offsets = [0, 0, 0], sizes = [1, 4, 128], strides = [1, 1, 1]} : vector<9x4x128xbf16> to vector<1x4x128xbf16>
    %202 = vector.shape_cast %201 : vector<1x4x128xbf16> to vector<4x128xbf16>
    %cst_37 = arith.constant dense<0.000000e+00> : vector<64x128xf32>
    %203 = tpu.matmul %200, %202, %cst_37 {dimension_numbers = #tpu.dot_dimension_numbers<[1], [0], [0], [1], [0, 0, 1, 1], [], []>} : vector<64x4xbf16>, vector<4x128xbf16>, vector<64x128xf32> -> vector<64x128xf32>
    %204 = arith.addf %197, %203 : vector<64x128xf32>
    %205 = vector.extract_strided_slice %1 {offsets = [2, 0, 1, 0], sizes = [1, 8, 8, 4], strides = [1, 1, 1, 1]} : vector<4x9x9x4xbf16> to vector<1x8x8x4xbf16>
    %206 = vector.shape_cast %205 : vector<1x8x8x4xbf16> to vector<8x8x4xbf16>
    %207 = vector.shape_cast %206 : vector<8x8x4xbf16> to vector<64x4xbf16>
    %208 = vector.extract_strided_slice %2 {offsets = [1, 0, 0], sizes = [1, 4, 128], strides = [1, 1, 1]} : vector<9x4x128xbf16> to vector<1x4x128xbf16>
    %209 = vector.shape_cast %208 : vector<1x4x128xbf16> to vector<4x128xbf16>
    %cst_38 = arith.constant dense<0.000000e+00> : vector<64x128xf32>
    %210 = tpu.matmul %207, %209, %cst_38 {dimension_numbers = #tpu.dot_dimension_numbers<[1], [0], [0], [1], [0, 0, 1, 1], [], []>} : vector<64x4xbf16>, vector<4x128xbf16>, vector<64x128xf32> -> vector<64x128xf32>
    %211 = arith.addf %204, %210 : vector<64x128xf32>
    %212 = vector.extract_strided_slice %1 {offsets = [3, 0, 1, 0], sizes = [1, 8, 8, 4], strides = [1, 1, 1, 1]} : vector<4x9x9x4xbf16> to vector<1x8x8x4xbf16>
    %213 = vector.shape_cast %212 : vector<1x8x8x4xbf16> to vector<8x8x4xbf16>
    %214 = vector.shape_cast %213 : vector<8x8x4xbf16> to vector<64x4xbf16>
    %215 = vector.extract_strided_slice %2 {offsets = [2, 0, 0], sizes = [1, 4, 128], strides = [1, 1, 1]} : vector<9x4x128xbf16> to vector<1x4x128xbf16>
    %216 = vector.shape_cast %215 : vector<1x4x128xbf16> to vector<4x128xbf16>
    %cst_39 = arith.constant dense<0.000000e+00> : vector<64x128xf32>
    %217 = tpu.matmul %214, %216, %cst_39 {dimension_numbers = #tpu.dot_dimension_numbers<[1], [0], [0], [1], [0, 0, 1, 1], [], []>} : vector<64x4xbf16>, vector<4x128xbf16>, vector<64x128xf32> -> vector<64x128xf32>
    %218 = arith.addf %211, %217 : vector<64x128xf32>
    %219 = vector.extract_strided_slice %1 {offsets = [1, 1, 0, 0], sizes = [1, 8, 8, 4], strides = [1, 1, 1, 1]} : vector<4x9x9x4xbf16> to vector<1x8x8x4xbf16>
    %220 = vector.shape_cast %219 : vector<1x8x8x4xbf16> to vector<8x8x4xbf16>
    %221 = vector.shape_cast %220 : vector<8x8x4xbf16> to vector<64x4xbf16>
    %222 = vector.extract_strided_slice %2 {offsets = [3, 0, 0], sizes = [1, 4, 128], strides = [1, 1, 1]} : vector<9x4x128xbf16> to vector<1x4x128xbf16>
    %223 = vector.shape_cast %222 : vector<1x4x128xbf16> to vector<4x128xbf16>
    %cst_40 = arith.constant dense<0.000000e+00> : vector<64x128xf32>
    %224 = tpu.matmul %221, %223, %cst_40 {dimension_numbers = #tpu.dot_dimension_numbers<[1], [0], [0], [1], [0, 0, 1, 1], [], []>} : vector<64x4xbf16>, vector<4x128xbf16>, vector<64x128xf32> -> vector<64x128xf32>
    %225 = arith.addf %218, %224 : vector<64x128xf32>
    %226 = vector.extract_strided_slice %1 {offsets = [0, 1, 1, 0], sizes = [1, 8, 8, 4], strides = [1, 1, 1, 1]} : vector<4x9x9x4xbf16> to vector<1x8x8x4xbf16>
    %227 = vector.shape_cast %226 : vector<1x8x8x4xbf16> to vector<8x8x4xbf16>
    %228 = vector.shape_cast %227 : vector<8x8x4xbf16> to vector<64x4xbf16>
    %229 = vector.extract_strided_slice %2 {offsets = [4, 0, 0], sizes = [1, 4, 128], strides = [1, 1, 1]} : vector<9x4x128xbf16> to vector<1x4x128xbf16>
    %230 = vector.shape_cast %229 : vector<1x4x128xbf16> to vector<4x128xbf16>
    %cst_41 = arith.constant dense<0.000000e+00> : vector<64x128xf32>
    %231 = tpu.matmul %228, %230, %cst_41 {dimension_numbers = #tpu.dot_dimension_numbers<[1], [0], [0], [1], [0, 0, 1, 1], [], []>} : vector<64x4xbf16>, vector<4x128xbf16>, vector<64x128xf32> -> vector<64x128xf32>
    %232 = arith.addf %225, %231 : vector<64x128xf32>
    %233 = vector.extract_strided_slice %1 {offsets = [1, 1, 1, 0], sizes = [1, 8, 8, 4], strides = [1, 1, 1, 1]} : vector<4x9x9x4xbf16> to vector<1x8x8x4xbf16>
    %234 = vector.shape_cast %233 : vector<1x8x8x4xbf16> to vector<8x8x4xbf16>
    %235 = vector.shape_cast %234 : vector<8x8x4xbf16> to vector<64x4xbf16>
    %236 = vector.extract_strided_slice %2 {offsets = [5, 0, 0], sizes = [1, 4, 128], strides = [1, 1, 1]} : vector<9x4x128xbf16> to vector<1x4x128xbf16>
    %237 = vector.shape_cast %236 : vector<1x4x128xbf16> to vector<4x128xbf16>
    %cst_42 = arith.constant dense<0.000000e+00> : vector<64x128xf32>
    %238 = tpu.matmul %235, %237, %cst_42 {dimension_numbers = #tpu.dot_dimension_numbers<[1], [0], [0], [1], [0, 0, 1, 1], [], []>} : vector<64x4xbf16>, vector<4x128xbf16>, vector<64x128xf32> -> vector<64x128xf32>
    %239 = arith.addf %232, %238 : vector<64x128xf32>
    %240 = vector.extract_strided_slice %1 {offsets = [3, 1, 0, 0], sizes = [1, 8, 8, 4], strides = [1, 1, 1, 1]} : vector<4x9x9x4xbf16> to vector<1x8x8x4xbf16>
    %241 = vector.shape_cast %240 : vector<1x8x8x4xbf16> to vector<8x8x4xbf16>
    %242 = vector.shape_cast %241 : vector<8x8x4xbf16> to vector<64x4xbf16>
    %243 = vector.extract_strided_slice %2 {offsets = [6, 0, 0], sizes = [1, 4, 128], strides = [1, 1, 1]} : vector<9x4x128xbf16> to vector<1x4x128xbf16>
    %244 = vector.shape_cast %243 : vector<1x4x128xbf16> to vector<4x128xbf16>
    %cst_43 = arith.constant dense<0.000000e+00> : vector<64x128xf32>
    %245 = tpu.matmul %242, %244, %cst_43 {dimension_numbers = #tpu.dot_dimension_numbers<[1], [0], [0], [1], [0, 0, 1, 1], [], []>} : vector<64x4xbf16>, vector<4x128xbf16>, vector<64x128xf32> -> vector<64x128xf32>
    %246 = arith.addf %239, %245 : vector<64x128xf32>
    %247 = vector.extract_strided_slice %1 {offsets = [2, 1, 1, 0], sizes = [1, 8, 8, 4], strides = [1, 1, 1, 1]} : vector<4x9x9x4xbf16> to vector<1x8x8x4xbf16>
    %248 = vector.shape_cast %247 : vector<1x8x8x4xbf16> to vector<8x8x4xbf16>
    %249 = vector.shape_cast %248 : vector<8x8x4xbf16> to vector<64x4xbf16>
    %250 = vector.extract_strided_slice %2 {offsets = [7, 0, 0], sizes = [1, 4, 128], strides = [1, 1, 1]} : vector<9x4x128xbf16> to vector<1x4x128xbf16>
    %251 = vector.shape_cast %250 : vector<1x4x128xbf16> to vector<4x128xbf16>
    %cst_44 = arith.constant dense<0.000000e+00> : vector<64x128xf32>
    %252 = tpu.matmul %249, %251, %cst_44 {dimension_numbers = #tpu.dot_dimension_numbers<[1], [0], [0], [1], [0, 0, 1, 1], [], []>} : vector<64x4xbf16>, vector<4x128xbf16>, vector<64x128xf32> -> vector<64x128xf32>
    %253 = arith.addf %246, %252 : vector<64x128xf32>
    %254 = vector.extract_strided_slice %1 {offsets = [3, 1, 1, 0], sizes = [1, 8, 8, 4], strides = [1, 1, 1, 1]} : vector<4x9x9x4xbf16> to vector<1x8x8x4xbf16>
    %255 = vector.shape_cast %254 : vector<1x8x8x4xbf16> to vector<8x8x4xbf16>
    %256 = vector.shape_cast %255 : vector<8x8x4xbf16> to vector<64x4xbf16>
    %257 = vector.extract_strided_slice %2 {offsets = [8, 0, 0], sizes = [1, 4, 128], strides = [1, 1, 1]} : vector<9x4x128xbf16> to vector<1x4x128xbf16>
    %258 = vector.shape_cast %257 : vector<1x4x128xbf16> to vector<4x128xbf16>
    %cst_45 = arith.constant dense<0.000000e+00> : vector<64x128xf32>
    %259 = tpu.matmul %256, %258, %cst_45 {dimension_numbers = #tpu.dot_dimension_numbers<[1], [0], [0], [1], [0, 0, 1, 1], [], []>} : vector<64x4xbf16>, vector<4x128xbf16>, vector<64x128xf32> -> vector<64x128xf32>
    %260 = arith.addf %253, %259 : vector<64x128xf32>
    %261 = arith.maximumf %196, %260 : vector<64x128xf32>
    %c0_46 = arith.constant 0 : index
    %c0_47 = arith.constant 0 : index
    %262 = vector.load %arg3[%c0_46, %c0_47] : memref<1x128xf32, #tpu.memory_space<vmem>>, vector<1x128xf32>
    %263 = vector.broadcast %262 : vector<1x128xf32> to vector<64x128xf32>
    %264 = arith.addf %261, %263 : vector<64x128xf32>
    %cst_48 = arith.constant 0.000000e+00 : f32
    %265 = vector.broadcast %cst_48 : f32 to vector<64x128xf32>
    %266 = arith.maximumf %264, %265 : vector<64x128xf32>
    %c0_49 = arith.constant 0 : index
    %c0_50 = arith.constant 0 : index
    %c0_51 = arith.constant 0 : index
    %267 = vector.load %arg4[%c0_49, %c0_50, %c0_51] : memref<1x64x128xf32, #tpu.memory_space<vmem>>, vector<1x64x128xf32>
    %268 = vector.shape_cast %267 : vector<1x64x128xf32> to vector<64x128xf32>
    %269 = vector.shape_cast %266 : vector<64x128xf32> to vector<1x64x128xf32>
    tpu.vector_store %arg4[%c0_49, %c0_50, %c0_51], %269 {strides = array<i32>} : memref<1x64x128xf32, #tpu.memory_space<vmem>>, vector<1x64x128xf32>,
    return
  }
  func.func @transform_0(%arg0: i32) -> (i32, i32, i32, i32, i32) {
    %c0_i32 = arith.constant 0 : i32
    %c0_i32_0 = arith.constant 0 : i32
    %c0_i32_1 = arith.constant 0 : i32
    %c0_i32_2 = arith.constant 0 : i32
    %c0_i32_3 = arith.constant 0 : i32
    return %arg0, %c0_i32, %c0_i32_0, %c0_i32_1, %c0_i32_2 : i32, i32, i32, i32, i32
  }
  func.func @transform_1(%arg0: i32) -> (i32, i32, i32) {
    %c0_i32 = arith.constant 0 : i32
    %c0_i32_0 = arith.constant 0 : i32
    %c0_i32_1 = arith.constant 0 : i32
    %c0_i32_2 = arith.constant 0 : i32
    return %c0_i32, %c0_i32_0, %c0_i32_1 : i32, i32, i32
  }
  func.func @transform_2(%arg0: i32) -> (i32, i32) {
    %c0_i32 = arith.constant 0 : i32
    %c0_i32_0 = arith.constant 0 : i32
    %c0_i32_1 = arith.constant 0 : i32
    return %c0_i32, %c0_i32_0 : i32, i32
  }
  func.func @transform_3(%arg0: i32) -> (i32, i32, i32) {
    %c0_i32 = arith.constant 0 : i32
    %c0_i32_0 = arith.constant 0 : i32
    %c0_i32_1 = arith.constant 0 : i32
    return %arg0, %c0_i32, %c0_i32_0 : i32, i32, i32
  }
}

</mosaic_0001>

<bundles_post_ra>
// kernel: tpu_custom_call.1
= control target key start
LH: loop header
LB: loop body
LE: loop exit
PB: predicated region body
PF: predicated region fallthrough
CT: control target
= control target key end

     0   :  { %8 = vsyncpa [#allocation3], 0  ;;  %s4170_s0 = inlined_call_operand.vmem [shape: bf16[2,4,9,9,4], index: 0, kind: input, shape index: {}]   ;;  %s4171_s1 = inlined_call_operand.vmem [shape: bf16[9,4,128], index: 1, kind: input, shape index: {}]   ;;  %s4172_s2 = inlined_call_operand.vmem [shape: f32[1,128], index: 2, kind: input, shape index: {}]   ;;  %s4173_s3 = inlined_call_operand.hbm [shape: f32[2,64,128], index: 3, kind: output, shape index: {}]  }
   0x1   :  { %10 = vsyncpa [#allocation3 + $0x1], 0  ;;  %s2834_s12 = smov 0   ;;  %s2836_s13 = smov 0  }
   0x2   :  { %s2838_s14 = smov 0   ;;  %s2840_s15 = smov 0  }
   0x3 LB: > { %s2855_s16 = sadd.s32 4294967295, %s2810_s15   ;;  %s2549_s17 = sadd.s32 4294967294, %s2810_s15   ;;  %s2810_s15 = sphi %s2840_s15, %s4377_s15   ;;  %s2806_s14 = sphi %s2838_s14, %s4376_s14   ;;  %s2802_s13 = sphi %s2836_s13, %s4375_s13   ;;  %s2798_s12 = sphi %s2834_s12, %s4374_s12  }
   0x4   : > { %s2859_s18 = sadd.s32 1, %s2810_s15   ;;  %s91_s19 = sadd.s32 1, %s2806_s14 }
   0x5   : > { %s88_s20 = ssub.s32 %s2810_s15, %s2859_s18  ;;  %p101_p0 = scmp.ne.s32.totalorder %s2806_s14, %s2802_s13 }
   0x6   : > { %p89_p1 = scmp.eq.s32.totalorder %s88_s20, 0  ;;  %p102_p2 = scmp.eq.s32.totalorder %s2855_s16, 1 }
   0x7   : > { %p107_p3 = scmp.ne.s32.totalorder %s2802_s13, %s2798_s12  ;;  %p108_p4 = scmp.eq.s32.totalorder %s2549_s17, 1 }
   0x8   : > { %s2870_s21 = scalar_select %p89_p1, %s2806_s14, %s91_s19  }
   0x9   : > { %p2872_p5 = por %p102_p2, %p101_p0  ;;  %p2876_p6 = por %p108_p4, %p107_p3 }
   0xa   : > { %p2552_p7 = scmp.ge.s32.totalorder %s2810_s15, 1  ;;  %p140_p8 = scmp.lt.s32.totalorder %s2810_s15, 3 }
   0xc   : > { %p141_p9 = pnand %p2552_p7, %p140_p8 }
   0xe   : > { %144 = sbr.rel (%p141_p9) target bundleno = 756 (0x2f4), region = 32 }
  0x13   : > { %v243_v0 = vld [vmem:[%s4171_s1 + $0x2] sm:$0x3]  ;;  %vm284_vm0 = vcmask 1041408   ;;  %v242_v1 = vld [vmem:[%s4171_s1] sm:$0x3]  ;;  %p164_p10 = scmp.lt.s32.totalorder %s2855_s16, 1 }
  0x14   : > { %v2890_v2 = vsel %vm284_vm0, %v243_v0, 0  ;;  %v2893_v3 = vsel %vm284_vm0, %v242_v1, 0  ;;  %v245_v4 = vld [vmem:[%s4171_s1 + $0x6] sm:$0x3]  ;;  %v244_v6 = vld [vmem:[%s4171_s1 + $0x4] sm:$0x3] }
  0x15   : > { %4248 = vst [vmem:[#allocation5_spill] sm:$0xff] %v2893_v3  ;;  %295 = vmatpush.bf16.msra.mxu0 %v2890_v2  ;;  %359 = vmatpush.bf16.msra.mxu1 %v2893_v3  ;;  %s165_s30 = scalar_select %p164_p10, %s2855_s16, 1  ;;  %v2902_v5 = vsel %vm284_vm0, %v245_v4, 0  ;;  %v2909_v7 = vsel %vm284_vm0, %v244_v6, 0  ;;  %v248_v8 = vld [vmem:[%s4171_s1 + $0xc] sm:$0x3] }
  0x16   : > { %602 = vmatpush.bf16.msra.mxu3 %v2902_v5  ;;  %4249 = vst [vmem:[#allocation6_spill] sm:$0xff] %v2909_v7  ;;  %530 = vmatpush.bf16.msra.mxu2 %v2909_v7  ;;  %v2916_v9 = vsel %vm284_vm0, %v248_v8, 0  ;;  %v246_v10 = vld [vmem:[%s4171_s1 + $0x8] sm:$0x3]  ;;  %v249_v11 = vld [vmem:[%s4171_s1 + $0xe] sm:$0x3] }
  0x17   : > { %s2705_s8 = smul.u32 288, %s165_s30  ;;  %4250 = vst [vmem:[#allocation7_spill] sm:$0xff] %v2916_v9  ;;  %v2926_v12 = vsel %vm284_vm0, %v246_v10, 0  ;;  %v2929_v13 = vsel %vm284_vm0, %v249_v11, 0  ;;  %v247_v14 = vld [vmem:[%s4171_s1 + $0xa] sm:$0x3] }
  0x18   : > { %4251 = vst [vmem:[#allocation8_spill] sm:$0xff] %v2926_v12  ;;  %v2942_v15 = vsel %vm284_vm0, %v247_v14, 0  ;;  %vm271_vm1 = vcmask 31744   ;;  %vm381_vm2 = vsmask.f32 3328  ;;  %s161_s29 = sand.u32 1, %s2802_s13  }
  0x19   : > { %s2937_s26 = scalar_lea.vmem %s4170_s0, %s2705_s8  ;;  %674 = vmatpush.bf16.msrb.mxu0 %v2926_v12  ;;  %850 = vmatpush.bf16.msrb.mxu1 %v2942_v15  ;;  %vm382_vm3 = vsmask.f32 7440  ;;  %s2553_s5 = sshll.u32 %s161_s29, 6 }
  0x1a   : > { %908 = vmatpush.bf16.msrb.mxu2 %v2916_v9  ;;  %966 = vmatpush.bf16.msrb.mxu3 %v2929_v13  ;;  %v2945_v16 = vld [vmem:[%s2937_s26 + $0x48] sm:$0xf]  ;;  %v2948_v17 = vld [vmem:[%s2937_s26 + $0x50] sm:$0xf]  ;;  %v170_v18 = vld [vmem:[%s2937_s26] sm:$0xf] }
  0x1b   : > { %v259_v19 = vunpack.c.l.b16 %v2945_v16  ;;  %v4186_v20 = vunpack.c.l.b16 %v2948_v17  ;;  %v2955_v21 = vld [vmem:[%s2937_s26 + $0x8] sm:$0xf]  ;;  %v325_v22 = vunpack.c.l.b16 %v170_v18  ;;  %v385_v25 = vshrl.u32 %v170_v18, 16  ;;  %v2963_v26 = vld [vmem:[%s2937_s26 + $0x90] sm:$0xf]  ;;  %vm2990_vm4 = vmor %vm381_vm2, %vm382_vm3  ;;  %s4091_s6 = scalar_lea.vmem [#allocation2], %s2553_s5 }
  0x1c   : > { %v4184_v23 = vunpack.c.l.b16 %v2955_v21  ;;  %v2966_v27 = vld [vmem:[%s2937_s26 + $0x98] sm:$0xf]  ;;  %v388_v29 = vshll.u32 %v170_v18, 16  ;;  %v399_v31 = vshrl.u32 %v2955_v21, 16  ;;  %v402_v32 = vshll.u32 %v2955_v21, 16  ;;  %s2704_s7 = sshll.u32 %s2855_s16, 6 }
  0x1d   : > { %v2960_v24 = vpack.c.b16 %v4186_v20, %v259_v19  ;;  %v387_v30 = vrot.slane %v385_v25, 4  ;;  %v568_v34 = vunpack.c.l.b16 %v2963_v26  ;;  %v569_v35 = vunpack.c.l.b16 %v2966_v27  ;;  %v171_v36 = vld [vmem:[%s2937_s26 + $0x4] sm:$0x1]  ;;  %v173_v39 = vld [vmem:[%s2937_s26 + $0xc] sm:$0x1]  ;;  %s2483_s10 = scalar_lea.hbm %s4173_s3, %s2704_s7  ;;  %s2484_s11 = sshll.u32 %s4091_s6, 4  ;;  %s2485_s11 = int_to_ptr.vmem [resolvable:$true] %s2484_s11 }
  0x1e   : > { %v333_v28 = vpack.c.b16 %v4184_v23, %v325_v22  ;;  %v390_v33 = vrot.slane %v388_v29, 5  ;;  %v401_v37 = vrot.slane %v399_v31, 4  ;;  %v404_v38 = vrot.slane %v402_v32, 5  ;;  %v2983_v43 = vld [vmem:[%s2937_s26 + $0x58] sm:$0xf]  ;;  %s2486_s17 = sshll.u32 %s2483_s10, 4  ;;  %s2487_s17 = int_to_ptr.hbm [resolvable:$true] %s2486_s17 }
  0x1f   : > { %2555 = vmatmul.msk.bf16.vlgmr.msra.gmra.mxu0 %vm271_vm1, %v2960_v24  ;;  %v2980_v40 = vpack.c.b16 %v569_v35, %v568_v34  ;;  %v394_v42 = vshll.u32 %v171_v36, 16  ;;  %v2986_v44 = vld [vmem:[%s2937_s26 + $0x60] sm:$0xf]  ;;  %v408_v47 = vshll.u32 %v173_v39, 16  ;;  %v4185_v52 = vunpack.c.l.b16 %v2983_v43  ;;  %v3002_v57 = vld [vmem:[%s2937_s26 + $0x10] sm:$0xf] }
  0x20   : > { %2559 = vmatmul.msk.bf16.vlgmr.msra.gmra.mxu1 %vm271_vm1, %v333_v28  ;;  %v391_v41 = vor.u32 %v390_v33, %v387_v30  ;;  %v405_v46 = vor.u32 %v404_v38, %v401_v37  ;;  %v4182_v53 = vunpack.c.l.b16 %v2986_v44  ;;  %v3005_v58 = vld [vmem:[%s2937_s26 + $0x18] sm:$0xf]  ;;  %v4183_v61 = vunpack.c.l.b16 %v3002_v57  ;;  %v3016_v63 = vld [vmem:[%s2937_s26 + $0xa0] sm:$0xf]  ;;  %v3024_v8 = vld [vmem:[%s2937_s26 + $0xa8] sm:$0xf] }
  0x21   : > { %1074 = vmatpush.bf16.msra.mxu1 %v2890_v2  ;;  %4252 = vst [vmem:[#allocation9_spill] sm:$0xff] %v2980_v40  ;;  %2567 = vmatmul.msk.bf16.vlgmr.msra.gmra.mxu3 %vm271_vm1, %v2980_v40  ;;  %v396_v49 = vrot.slane %v394_v42, 5  ;;  %v410_v51 = vrot.slane %v408_v47, 5  ;;  %v4180_v62 = vunpack.c.l.b16 %v3005_v58  ;;  %v413_v1 = vshrl.u32 %v3002_v57, 16  ;;  %v175_v25 = vld [vmem:[%s2937_s26 + $0x14] sm:$0x1] }
  0x22   : > { %v392_v48 = vrot.slane %v391_v41, 4  ;;  %1268 = vmatpush.bf16.msra.mxu3 %v2909_v7  ;;  %v406_v50 = vrot.slane %v405_v46, 4  ;;  %v3011_v60 = vpack.c.b16 %v4182_v53, %v4185_v52  ;;  %v416_v4 = vshll.u32 %v3002_v57, 16  ;;  %4255 = vst [vmem:[#allocation10_spill] sm:$0xff] %v3024_v8  ;;  %v177_v31 = vld [vmem:[%s2937_s26 + $0x1c] sm:$0x1] }
  0x23   : > { %v427_v6 = vshrl.u32 %v3005_v58, 16  ;;  %v334_v10 = vpack.c.b16 %v4180_v62, %v4183_v61  ;;  %v430_v11 = vshll.u32 %v3005_v58, 16  ;;  %v415_v14 = vrot.slane %v413_v1, 4  ;;  %v3052_v46 = vld [vmem:[%s2937_s26 + $0x68] sm:$0xf]  ;;  %s2472_s16 = scalar_lea.sflag [#allocation3], %s161_s29 }
  0x24   : > { %v397_v54 = vsel %vm2990_vm4, %v392_v48, %v396_v49  ;;  %v411_v55 = vsel %vm2990_vm4, %v406_v50, %v410_v51  ;;  %v418_v18 = vrot.slane %v416_v4, 5  ;;  %v570_v22 = vunpack.c.l.b16 %v3016_v63  ;;  %v3055_v47 = vld [vmem:[%s2937_s26 + $0x70] sm:$0xf]  ;;  %v3058_v49 = vld [vmem:[%s2937_s26 + $0x20] sm:$0xf]  ;;  %s2762_s19 = sshra.s32 %s2487_s17, 4  ;;  %s2763_s19 = int_to_ptr.hbm [resolvable:$true] %s2762_s19 }
  0x25   : > { %v496_v56 = vunpack.c.l.b16 %v397_v54  ;;  %v497_v59 = vunpack.c.l.b16 %v411_v55  ;;  %v429_v19 = vrot.slane %v427_v6, 4  ;;  %v432_v28 = vrot.slane %v430_v11, 5  ;;  %v3063_v51 = vld [vmem:[%s2937_s26 + $0x28] sm:$0xf]  ;;  %v185_v23 = vld [vmem:[%s2937_s26 + $0x3c] sm:$0x1]  ;;  %p2769_p0 = scmp.lt.s32.totalorder %s2763_s19, %s4173_s3 }
  0x26   : > { %v4176_v29 = vunpack.c.l.b16 %v3024_v8  ;;  %v3039_v30 = vpack.c.b16 %v570_v22, %v569_v35  ;;  %v419_v32 = vor.u32 %v418_v18, %v415_v14  ;;  %v422_v34 = vshll.u32 %v175_v25, 16  ;;  %v3152_v20 = vld [vmem:[%s2937_s26 + $0xc0] sm:$0xf]  ;;  %s2764_s20 = scalar_lea.hbm %s2763_s19, 64 }
  0x27   : > { %v3018_v0 = vpack.c.b16 %v497_v59, %v496_v56  ;;  %v433_v37 = vor.u32 %v432_v28, %v429_v19  ;;  %v436_v39 = vshll.u32 %v177_v31, 16  ;;  %v4181_v56 = vunpack.c.l.b16 %v3052_v46  ;;  %v3081_v19 = vld [vmem:[%s2937_s26 + $0xb0] sm:$0xf]  ;;  %v179_v31 = vld [vmem:[%s2937_s26 + $0x24] sm:$0x1]  ;;  %4262 = vst [vmem:[#allocation17_spill] sm:$0xff] %v3152_v20  ;;  %p2765_p11 = scmp.ne.s32.totalorder %s2763_s19, %s2764_s20 }
  0x28   : > { %4256 = vst [vmem:[#allocation11_spill] sm:$0xff] %v3039_v30  ;;  %v3045_v33 = vpack.c.b16 %v4176_v29, %v570_v22  ;;  %v420_v36 = vrot.slane %v419_v32, 4  ;;  %v424_v38 = vrot.slane %v422_v34, 5  ;;  %v4178_v1 = vunpack.c.l.b16 %v3055_v47  ;;  %v3084_v22 = vld [vmem:[%s2937_s26 + $0xb8] sm:$0xf] }
  0x29   : > { %2563 = vmatmul.msk.bf16.vlgmr.msra.gmra.mxu2 %vm271_vm1, %v3018_v0  ;;  %v434_v41 = vrot.slane %v433_v37, 4  ;;  %v438_v42 = vrot.slane %v436_v39, 5  ;;  %v4179_v4 = vunpack.c.l.b16 %v3058_v49  ;;  %v4177_v6 = vunpack.c.l.b16 %v3063_v51  ;;  %4258 = vst [vmem:[#allocation13_spill] sm:$0xff] %v3081_v19  ;;  %v181_v37 = vld [vmem:[%s2937_s26 + $0x2c] sm:$0x1]  ;;  %p2766_p12 = pnand %p2765_p11, %p2872_p5 }
  0x2a   : > { %1103 = vmatpush.bf16.msra.mxu2 %v2893_v3  ;;  %4257 = vst [vmem:[#allocation12_spill] sm:$0xff] %v3045_v33  ;;  %v425_v35 = vsel %vm2990_vm4, %v420_v36, %v424_v38  ;;  %v444_v11 = vshll.u32 %v3058_v49, 16  ;;  %v455_v18 = vshrl.u32 %v3063_v51, 16  ;;  %v3091_v32 = vpack.c.b16 %v4178_v1, %v4181_v56  ;;  %v183_v29 = vld [vmem:[%s2937_s26 + $0x34] sm:$0x1] }
  0x2b   : > { %v498_v48 = vunpack.c.l.b16 %v425_v35  ;;  %v439_v50 = vsel %vm2990_vm4, %v434_v41, %v438_v42  ;;  %4259 = vst [vmem:[#allocation14_spill] sm:$0xff] %v3084_v22  ;;  %v335_v38 = vpack.c.b16 %v4177_v6, %v4179_v4  ;;  %v4175_v39 = vunpack.c.l.b16 %v3081_v19  ;;  %p2767_p13 = pneg %p2766_p12 }
  0x2c   : > { %v3065_v54 = vunpack.c.l.b16 %v439_v50  ;;  %v446_v28 = vrot.slane %v444_v11, 5  ;;  %4260 = vst [vmem:[#allocation15_spill] sm:$0xff] %v3091_v32  ;;  %v457_v34 = vrot.slane %v455_v18, 4  ;;  %v4174_v41 = vunpack.c.l.b16 %v3084_v22 }
  0x2d   : > { %v3067_v55 = vpack.c.b16 %v498_v48, %v497_v59  ;;  %v458_v59 = vshll.u32 %v3063_v51, 16  ;;  %v450_v42 = vshll.u32 %v179_v31, 16  ;;  %v3114_v31 = vld [vmem:[%s2937_s26 + $0x30] sm:$0xf]  ;;  %v492_v61 = vshll.u32 %v185_v23, 16 }
  0x2e   : > { %v3076_v14 = vpack.c.b16 %v3065_v54, %v498_v48  ;;  %v4196_v53 = vunpack.c.l.b16 %v3114_v31 }
  0x2f   : > { %2556 = vmatmul.msk.bf16.gmra.mxu0 %vm271_vm1, %v3011_v60  ;;  %v460_v36 = vrot.slane %v458_v59, 5  ;;  %v452_v11 = vrot.slane %v450_v42, 5  ;;  %v3109_v59 = vpack.c.b16 %v4174_v41, %v4175_v39  ;;  %v719_v42 = vshrl.u32 %v2966_v27, 16 }
  0x30   : > { %2560 = vmatmul.msk.bf16.gmra.mxu1 %vm271_vm1, %v334_v10  ;;  %v441_v10 = vshrl.u32 %v3058_v49, 16 }
  0x31   : > { %2568 = vmatmul.msk.bf16.gmra.mxu3 %vm271_vm1, %v3045_v33  ;;  %v461_v48 = vor.u32 %v460_v36, %v457_v34  ;;  %4261 = vst [vmem:[#allocation16_spill] sm:$0xff] %v3109_v59  ;;  %v705_v34 = vshrl.u32 %v2963_v26, 16  ;;  %v721_v56 = vrot.slane %v719_v42, 4  ;;  %v733_v42 = vshrl.u32 %v3016_v63, 16 }
  0x32   : > { %v443_v25 = vrot.slane %v441_v10, 4  ;;  %v464_v10 = vshll.u32 %v181_v37, 16  ;;  %v3120_v37 = vld [vmem:[%s2937_s26 + $0x38] sm:$0xf]  ;;  %v494_v33 = vrot.slane %v492_v61, 5 }
  0x33   : > { %v462_v18 = vrot.slane %v461_v48, 4  ;;  %v722_v48 = vshll.u32 %v2966_v27, 16  ;;  %v486_v41 = vshll.u32 %v3120_v37, 16  ;;  %v707_v27 = vrot.slane %v705_v34, 4  ;;  %v250_v61 = vld [vmem:[%s4171_s1 + $0x10] sm:$0x3] }
  0x34   : > { %v447_v35 = vor.u32 %v446_v28, %v443_v25  ;;  %v466_v25 = vrot.slane %v464_v10, 5  ;;  %v3133_v10 = vld [vmem:[%s2937_s26 + $0x80] sm:$0xf]  ;;  %v4265_v30 = vunpack.c.l.b16 %v3120_v37  ;;  %v735_v40 = vrot.slane %v733_v42, 4 }
  0x35   : > { %v4188_v6 = vunpack.c.l.b16 %v3133_v10  ;;  %v724_v52 = vrot.slane %v722_v48, 5 }
  0x36   : > { %v448_v50 = vrot.slane %v447_v35, 4  ;;  %v467_v36 = vsel %vm2990_vm4, %v462_v18, %v466_v25  ;;  %v3124_v35 = vld [vmem:[%s2937_s26 + $0x78] sm:$0xf]  ;;  %v483_v25 = vshrl.u32 %v3120_v37, 16 }
  0x37   : > { %v3136_v18 = vunpack.c.l.b16 %v467_v36  ;;  %v4189_v39 = vunpack.c.l.b16 %v3124_v35  ;;  %v488_v36 = vrot.slane %v486_v41, 5  ;;  %v478_v41 = vshll.u32 %v183_v29, 16 }
  0x38   : > { %v453_v28 = vsel %vm2990_vm4, %v448_v50, %v452_v11  ;;  %v469_v11 = vshrl.u32 %v3114_v31, 16  ;;  %v485_v4 = vrot.slane %v483_v25, 4  ;;  %v736_v25 = vshll.u32 %v3016_v63, 16 }
  0x39   : > { %2564 = vmatmul.msk.bf16.gmra.mxu2 %vm271_vm1, %v3076_v14  ;;  %v3130_v50 = vunpack.c.l.b16 %v453_v28  ;;  %v3163_v48 = vpack.c.b16 %v4188_v6, %v4189_v39  ;;  %v207_v6 = vld [vmem:[%s2937_s26 + $0x94] sm:$0x1]  ;;  %v209_v39 = vld [vmem:[%s2937_s26 + $0x9c] sm:$0x1] }
  0x3a   : > { %v471_v28 = vrot.slane %v469_v11, 4  ;;  %v3155_v11 = vld [vmem:[%s2937_s26 + $0xc8] sm:$0xf]  ;;  %v738_v7 = vrot.slane %v736_v25, 5  ;;  %v3198_v25 = vsel %vm284_vm0, %v250_v61, 0 }
  0x3b   : > { %v3149_v34 = vpack.c.b16 %v3136_v18, %v3130_v50  ;;  %4263 = vst [vmem:[#allocation18_spill] sm:$0xff] %v3155_v11  ;;  %v4194_v29 = vunpack.c.l.b16 %v3155_v11  ;;  %1037 = vmatpush.bf16.msra.mxu0 %v3198_v25 }
  0x3c   : > { %4264 = vst [vmem:[#allocation19_spill] sm:$0xff] %v3163_v48 }
  0x3d   : > { %4267 = vst [vmem:[#allocation21_spill] sm:$0xff] %v3198_v25 }
  0x3f   : > { %2557 = vmatmul.msk.bf16.gmra.mxu0 %vm271_vm1, %v3091_v32 }
  0x40   : > { %2561 = vmatmul.msk.bf16.gmra.mxu1 %vm271_vm1, %v335_v38  ;;  %v708_v38 = vshll.u32 %v2963_v26, 16  ;;  %v472_v26 = vshll.u32 %v3114_v31, 16 }
  0x41   : > { %2569 = vmatmul.msk.bf16.gmra.mxu3 %vm271_vm1, %v3109_v59  ;;  %v336_v59 = vpack.c.b16 %v4265_v30, %v4196_v53  ;;  %v728_v30 = vshll.u32 %v209_v39, 16  ;;  %v739_v39 = vor.u32 %v738_v7, %v735_v40  ;;  %v211_v7 = vld [vmem:[%s2937_s26 + $0xa4] sm:$0x1] }
  0x42   : > { %v474_v1 = vrot.slane %v472_v26, 5  ;;  %v710_v62 = vrot.slane %v708_v38, 5  ;;  %v489_v38 = vor.u32 %v488_v36, %v485_v4  ;;  %v480_v36 = vrot.slane %v478_v41, 5 }
  0x43   : > { %v730_v42 = vrot.slane %v728_v30, 5  ;;  %v740_v61 = vrot.slane %v739_v39, 4 }
  0x44   : > { %v475_v26 = vor.u32 %v474_v1, %v471_v28  ;;  %v4195_v1 = vunpack.c.l.b16 %v3152_v20  ;;  %v711_v4 = vor.u32 %v710_v62, %v707_v27  ;;  %v725_v28 = vor.u32 %v724_v52, %v721_v56 }
  0x45   : > { %v490_v23 = vrot.slane %v489_v38, 4  ;;  %v714_v62 = vshll.u32 %v207_v6, 16  ;;  %v3195_v6 = vld [vmem:[%s2937_s26 + $0xe8] sm:$0xf] }
  0x46   : > { %v476_v63 = vrot.slane %v475_v26, 4  ;;  %v3182_v52 = vpack.c.b16 %v4194_v29, %v4195_v1  ;;  %v712_v56 = vrot.slane %v711_v4, 4  ;;  %v726_v27 = vrot.slane %v725_v28, 4 }
  0x47   : > { %v495_v41 = vsel %vm2990_vm4, %v490_v23, %v494_v33  ;;  %v716_v38 = vrot.slane %v714_v62, 5  ;;  %v747_v4 = vshrl.u32 %v3024_v8, 16  ;;  %v750_v28 = vshll.u32 %v3024_v8, 16 }
  0x48   : > { %4266 = vst [vmem:[#allocation20_spill] sm:$0xff] %v3182_v52  ;;  %v481_v26 = vsel %vm2990_vm4, %v476_v63, %v480_v36  ;;  %v3207_v36 = vld [vmem:[%s2937_s26 + $0xd8] sm:$0xf]  ;;  %v3212_v40 = vunpack.c.l.b16 %v495_v41  ;;  %v731_v62 = vsel %vm2990_vm4, %v726_v27, %v730_v42  ;;  %v642_v30 = vunpack.c.l.b16 %v3195_v6 }
  0x49   : > { %2565 = vmatmul.msk.bf16.gmra.mxu2 %vm271_vm1, %v3149_v34  ;;  %v3204_v63 = vunpack.c.l.b16 %v481_v26  ;;  %v717_v23 = vsel %vm2990_vm4, %v712_v56, %v716_v38  ;;  %v640_v26 = vunpack.c.l.b16 %v3207_v36  ;;  %v742_v1 = vshll.u32 %v211_v7, 16  ;;  %v213_v38 = vld [vmem:[%s2937_s26 + $0xac] sm:$0x1] }
  0x4a   : > { %v816_v53 = vunpack.c.l.b16 %v717_v23  ;;  %v817_v8 = vunpack.c.l.b16 %v731_v62  ;;  %v3253_v23 = vld [vmem:[%s2937_s26 + $0xf0] sm:$0xf]  ;;  %v764_v62 = vshll.u32 %v3081_v19, 16 }
  0x4b   : > { %v3224_v41 = vpack.c.b16 %v3212_v40, %v3204_v63  ;;  %v744_v56 = vrot.slane %v742_v1, 5  ;;  %v4270_v1 = vunpack.c.l.b16 %v2948_v17 }
  0x4c   : > { %v3231_v42 = vpack.c.b16 %v817_v8, %v816_v53 }
  0x4d   : > { %v745_v27 = vsel %vm2990_vm4, %v740_v61, %v744_v56  ;;  %v775_v61 = vshrl.u32 %v3084_v22, 16 }
  0x4e   : > { %v818_v39 = vunpack.c.l.b16 %v745_v27 }
  0x4f   : > { %2558 = vmatmul.msk.bf16.gmra.mxu0 %vm271_vm1, %v3163_v48  ;;  %v752_v48 = vrot.slane %v750_v28, 5 }
  0x50   : > { %2562 = vmatmul.msk.bf16.gmra.mxu1 %vm271_vm1, %v336_v59  ;;  %v3190_v59 = vld [vmem:[%s2937_s26 + $0xe0] sm:$0xf]  ;;  %v3235_v28 = vpack.c.b16 %v818_v39, %v817_v8  ;;  %v761_v8 = vshrl.u32 %v3081_v19, 16  ;;  %v4274_v19 = vunpack.c.l.b16 %v3002_v57  ;;  %v4276_v57 = vunpack.c.l.b16 %v2986_v44 }
  0x51   : > { %2570 = vmatmul.msk.bf16.gmra.mxu3 %vm271_vm1, %v3182_v52  ;;  %v641_v33 = vunpack.c.l.b16 %v3190_v59  ;;  %v749_v52 = vrot.slane %v747_v4, 4  ;;  %v756_v4 = vshll.u32 %v213_v38, 16  ;;  %v4207_v38 = vunpack.c.l.b16 %v3253_v23 }
  0x52   : > { %4269 = vst [vmem:[#allocation23_spill] sm:$0xff] %v3235_v28  ;;  %v763_v27 = vrot.slane %v761_v8, 4  ;;  %v4273_v28 = vunpack.c.l.b16 %v2955_v21 }
  0x53   : > { %v3220_v29 = vpack.c.b16 %v642_v30, %v641_v33  ;;  %v3227_v32 = vpack.c.b16 %v641_v33, %v640_v26  ;;  %v753_v7 = vor.u32 %v752_v48, %v749_v52  ;;  %v4271_v33 = vunpack.c.l.b16 %v2983_v43 }
  0x54   : > { %v758_v52 = vrot.slane %v756_v4, 5  ;;  %v778_v26 = vshll.u32 %v3084_v22, 16  ;;  %v766_v4 = vrot.slane %v764_v62, 5  ;;  %v215_v22 = vld [vmem:[%s2937_s26 + $0xb4] sm:$0x1] }
  0x55   : > { %4268 = vst [vmem:[#allocation22_spill] sm:$0xff] %v3220_v29  ;;  %v3245_v53 = vpack.c.b16 %v4271_v33, %v4270_v1  ;;  %v754_v48 = vrot.slane %v753_v7, 4  ;;  %v777_v1 = vrot.slane %v775_v61, 4  ;;  %v3268_v29 = vpack.c.b16 %v4274_v19, %v4273_v28 }
  0x56   : > { %v780_v33 = vrot.slane %v778_v26, 5  ;;  %v767_v8 = vor.u32 %v766_v4, %v763_v27  ;;  %v770_v62 = vshll.u32 %v215_v22, 16  ;;  %v4277_v19 = vunpack.c.l.b16 %v3052_v46 }
  0x57   : > { %v759_v56 = vsel %vm2990_vm4, %v754_v48, %v758_v52  ;;  %4275 = vst [vmem:[#allocation25_spill] sm:$0xff] %v3268_v29  ;;  %v3274_v48 = vpack.c.b16 %v4207_v38, %v642_v30  ;;  %v1126_v61 = vshrl.u32 %v2945_v16, 16  ;;  %v1129_v26 = vshll.u32 %v2945_v16, 16 }
  0x58   : > { %v3262_v7 = vunpack.c.l.b16 %v759_v56  ;;  %v781_v56 = vor.u32 %v780_v33, %v777_v1  ;;  %v3290_v30 = vpack.c.b16 %v4277_v19, %v4276_v57  ;;  %v772_v22 = vrot.slane %v770_v62, 5  ;;  %v3301_v57 = vld [vmem:[%s2937_s26 + $0xf8] sm:$0xf] }
  0x59   : > { %2566 = vmatmul.msk.bf16.gmra.mxu2 %vm271_vm1, %v3224_v41  ;;  %v1140_v27 = vshrl.u32 %v2948_v17, 16  ;;  %v1143_v4 = vshll.u32 %v2948_v17, 16  ;;  %v789_v1 = vshrl.u32 %v3152_v20, 16  ;;  %v792_v33 = vshll.u32 %v3152_v20, 16 }
  0x5a   : > { %4272 = vst [vmem:[#allocation24_spill] sm:$0xff] %v3262_v7  ;;  %v3277_v52 = vpack.c.b16 %v3262_v7, %v818_v39  ;;  %v768_v39 = vrot.slane %v767_v8, 4  ;;  %v782_v28 = vrot.slane %v781_v56, 4  ;;  %v3304_v8 = vld [vmem:[%s2937_s26 + $0x100] sm:$0xf]  ;;  %v803_v56 = vshrl.u32 %v3155_v11, 16 }
  0x5b   : > { %4278 = vst [vmem:[#allocation26_spill] sm:$0xff] %v3290_v30  ;;  %v806_v62 = vshll.u32 %v3155_v11, 16  ;;  %v1131_v19 = vrot.slane %v1129_v26, 5  ;;  %v1142_v38 = vrot.slane %v1140_v27, 4  ;;  %v1145_v20 = vrot.slane %v1143_v4, 5 }
  0x5c   : > { %4279 = vst [vmem:[#allocation27_spill] sm:$0xff] %v3304_v8  ;;  %v773_v16 = vsel %vm2990_vm4, %v768_v39, %v772_v22  ;;  %v794_v39 = vrot.slane %v792_v33, 5  ;;  %v805_v22 = vrot.slane %v803_v56, 4  ;;  %v219_v7 = vld [vmem:[%s2937_s26 + $0xc4] sm:$0x1] }
  0x5d   : > { %v1146_v4 = vor.u32 %v1145_v20, %v1142_v38  ;;  %v189_v20 = vld [vmem:[%s2937_s26 + $0x4c] sm:$0x1]  ;;  %v191_v38 = vld [vmem:[%s2937_s26 + $0x54] sm:$0x1] }
  0x5f   : > { %2571 = vmatmul.msk.bf16.vlgmr.msrb.gmra.mxu0 %vm271_vm1, %v3227_v32 }
  0x60   : > { %2575 = vmatmul.msk.bf16.vlgmr.msrb.gmra.mxu1 %vm271_vm1, %v3231_v42  ;;  %1305 = vmatpush.bf16.msrb.mxu0 %v2902_v5 }
  0x61   : > { %1342 = vmatpush.bf16.msrb.mxu1 %v2926_v12  ;;  %2583 = vmatmul.msk.bf16.vlgmr.msrb.gmra.mxu3 %vm271_vm1, %v3245_v53  ;;  %v217_v12 = vld [vmem:[%s2937_s26 + $0xbc] sm:$0x1] }
  0x62   : > { %1552 = vmatpush.bf16.msrb.mxu3 %v2916_v9  ;;  %v784_v21 = vshll.u32 %v217_v12, 16  ;;  %v791_v9 = vrot.slane %v789_v1, 4  ;;  %v4285_v1 = vunpack.c.l.b16 %v3301_v57 }
  0x64   : > { %v786_v12 = vrot.slane %v784_v21, 5  ;;  %v1128_v21 = vrot.slane %v1126_v61, 4  ;;  %v4283_v61 = vunpack.c.l.b16 %v3058_v49  ;;  %v795_v56 = vor.u32 %v794_v39, %v791_v9 }
  0x65   : > { %v798_v49 = vshll.u32 %v219_v7, 16  ;;  %v4287_v9 = vunpack.c.l.b16 %v3055_v47  ;;  %v4288_v39 = vunpack.c.l.b16 %v3124_v35 }
  0x66   : > { %v787_v17 = vsel %vm2990_vm4, %v782_v28, %v786_v12  ;;  %v808_v28 = vrot.slane %v806_v62, 5  ;;  %v4282_v12 = vunpack.c.l.b16 %v3005_v58  ;;  %v1132_v27 = vor.u32 %v1131_v19, %v1128_v21 }
  0x67   : > { %v3316_v11 = vunpack.c.l.b16 %v787_v17  ;;  %v1147_v19 = vrot.slane %v1146_v4, 4  ;;  %v3348_v7 = vpack.c.b16 %v4288_v39, %v4287_v9  ;;  %v800_v4 = vrot.slane %v798_v49, 5  ;;  %v3357_v9 = vld [vmem:[%s2937_s26 + $0x108] sm:$0xf] }
  0x68   : > { %v3322_v26 = vpack.c.b16 %v4283_v61, %v4282_v12  ;;  %v809_v58 = vor.u32 %v808_v28, %v805_v22  ;;  %v1133_v21 = vrot.slane %v1132_v27, 4  ;;  %v1135_v12 = vshll.u32 %v189_v20, 16 }
  0x69   : > { %2579 = vmatmul.msk.bf16.vlgmr.msrb.gmra.mxu2 %vm271_vm1, %v3268_v29  ;;  %4281 = vst [vmem:[#allocation29_spill] sm:$0xff] %v3316_v11  ;;  %v221_v29 = vld [vmem:[%s2937_s26 + $0xcc] sm:$0x1]  ;;  %v1149_v61 = vshll.u32 %v191_v38, 16  ;;  %v796_v28 = vrot.slane %v795_v56, 4 }
  0x6a   : > { %1515 = vmatpush.bf16.msrb.mxu2 %v2942_v15  ;;  %4284 = vst [vmem:[#allocation30_spill] sm:$0xff] %v3322_v26  ;;  %v812_v62 = vshll.u32 %v221_v29, 16  ;;  %v1137_v29 = vrot.slane %v1135_v12, 5  ;;  %v810_v27 = vrot.slane %v809_v58, 4  ;;  %v3360_v12 = vld [vmem:[%s2937_s26 + $0x110] sm:$0xf] }
  0x6b   : > { %v1151_v22 = vrot.slane %v1149_v61, 5  ;;  %v801_v56 = vsel %vm2990_vm4, %v796_v28, %v800_v4  ;;  %v4217_v61 = vunpack.c.l.b16 %v3360_v12  ;;  %v4292_v28 = vunpack.c.l.b16 %v3114_v31  ;;  %v193_v31 = vld [vmem:[%s2937_s26 + $0x5c] sm:$0x1] }
  0x6c   : > { %v3370_v39 = vunpack.c.l.b16 %v801_v56  ;;  %v1163_v56 = vshll.u32 %v193_v31, 16 }
  0x6d   : > { %v1152_v20 = vsel %vm2990_vm4, %v1147_v19, %v1151_v22  ;;  %v4218_v19 = vunpack.c.l.b16 %v3357_v9  ;;  %v4291_v22 = vunpack.c.l.b16 %v3063_v51 }
  0x6e   : > { %4289 = vst [vmem:[#allocation31_spill] sm:$0xff] %v3370_v39 }
  0x6f   : > { %2572 = vmatmul.msk.bf16.gmra.mxu0 %vm271_vm1, %v3274_v48  ;;  %v3378_v4 = vpack.c.b16 %v4292_v28, %v4291_v22  ;;  %v1165_v22 = vrot.slane %v1163_v56, 5  ;;  %v3406_v28 = vld [vmem:[%s2937_s26 + $0x40] sm:$0xf] }
  0x70   : > { %2576 = vmatmul.msk.bf16.gmra.mxu1 %vm271_vm1, %v3277_v52 }
  0x71   : > { %2584 = vmatmul.msk.bf16.gmra.mxu3 %vm271_vm1, %v3290_v30  ;;  %v3314_v30 = vunpack.c.l.b16 %v773_v16  ;;  %v4286_v16 = vunpack.c.l.b16 %v3304_v8  ;;  %4293 = vst [vmem:[#allocation33_spill] sm:$0xff] %v3378_v4 }
  0x73   : > { %4280 = vst [vmem:[#allocation28_spill] sm:$0xff] %v3314_v30  ;;  %v3330_v17 = vpack.c.b16 %v4286_v16, %v4285_v1  ;;  %v3334_v33 = vpack.c.b16 %v3316_v11, %v3314_v30  ;;  %v814_v1 = vrot.slane %v812_v62, 5  ;;  %v1138_v16 = vsel %vm2990_vm4, %v1133_v21, %v1137_v29 }
  0x74   : > { %v1237_v38 = vunpack.c.l.b16 %v1138_v16  ;;  %v1238_v11 = vunpack.c.l.b16 %v1152_v20  ;;  %v1154_v62 = vshrl.u32 %v2983_v43, 16  ;;  %v1157_v21 = vshll.u32 %v2983_v43, 16 }
  0x75   : > { %v815_v58 = vsel %vm2990_vm4, %v810_v27, %v814_v1  ;;  %v3381_v27 = vld [vmem:[%s2937_s26 + $0x88] sm:$0xf]  ;;  %v3387_v43 = vpack.c.b16 %v4217_v61, %v4218_v19  ;;  %v1168_v19 = vshrl.u32 %v2986_v44, 16 }
  0x76   : > { %v1245_v49 = vpack.c.b16 %v1238_v11, %v1237_v38  ;;  %v3372_v29 = vunpack.c.l.b16 %v815_v58  ;;  %4294 = vst [vmem:[#allocation34_spill] sm:$0xff] %v3381_v27  ;;  %v1156_v1 = vrot.slane %v1154_v62, 4  ;;  %v1159_v16 = vrot.slane %v1157_v21, 5 }
  0x77   : > { %v939_v51 = vunpack.c.l.b16 %v3381_v27  ;;  %v4295_v58 = vunpack.c.l.b16 %v3133_v10 }
  0x78   : > { %4290 = vst [vmem:[#allocation32_spill] sm:$0xff] %v3372_v29  ;;  %v3391_v20 = vpack.c.b16 %v3372_v29, %v3370_v39  ;;  %v1160_v38 = vor.u32 %v1159_v16, %v1156_v1  ;;  %v881_v16 = vunpack.c.l.b16 %v3406_v28  ;;  %v1170_v29 = vrot.slane %v1168_v19, 4 }
  0x79   : > { %2580 = vmatmul.msk.bf16.gmra.mxu2 %vm271_vm1, %v3322_v26  ;;  %v3403_v62 = vpack.c.b16 %v939_v51, %v4295_v58  ;;  %v1171_v51 = vshll.u32 %v2986_v44, 16  ;;  %v199_v26 = vld [vmem:[%s2937_s26 + $0x74] sm:$0x1] }
  0x7a   : > { %v1161_v21 = vrot.slane %v1160_v38, 4  ;;  %v4296_v38 = vunpack.c.l.b16 %v3120_v37 }
  0x7b   : > { %v1173_v39 = vrot.slane %v1171_v51, 5 }
  0x7c   : > { %v1166_v61 = vsel %vm2990_vm4, %v1161_v21, %v1165_v22  ;;  %v3419_v56 = vpack.c.b16 %v881_v16, %v4296_v38  ;;  %v195_v22 = vld [vmem:[%s2937_s26 + $0x64] sm:$0x1] }
  0x7d   : > { %v1239_v1 = vunpack.c.l.b16 %v1166_v61  ;;  %v1174_v44 = vor.u32 %v1173_v39, %v1170_v29  ;;  %v1177_v37 = vshll.u32 %v195_v22, 16  ;;  %v1196_v39 = vshrl.u32 %v3055_v47, 16 }
  0x7e   : > { %4297 = vst [vmem:[#allocation35_spill] sm:$0xff] %v3419_v56  ;;  %v1199_v29 = vshll.u32 %v3055_v47, 16  ;;  %v3440_v22 = vpack.c.b16 %v3130_v50, %v3065_v54  ;;  %v197_v47 = vld [vmem:[%s2937_s26 + $0x6c] sm:$0x1] }
  0x7f   : > { %2573 = vmatmul.msk.bf16.gmra.mxu0 %vm271_vm1, %v3330_v17  ;;  %v3413_v31 = vpack.c.b16 %v1239_v1, %v1238_v11  ;;  %v1175_v16 = vrot.slane %v1174_v44, 4  ;;  %v1179_v51 = vrot.slane %v1177_v37, 5  ;;  %v1198_v30 = vrot.slane %v1196_v39, 4 }
  0x80   : > { %2577 = vmatmul.msk.bf16.gmra.mxu1 %vm271_vm1, %v3334_v33  ;;  %4298 = vst [vmem:[#allocation36_spill] sm:$0xff] %v3440_v22  ;;  %v1205_v39 = vshll.u32 %v199_v26, 16  ;;  %v1387_v26 = vshrl.u32 %v3190_v59, 16 }
  0x81   : > { %2585 = vmatmul.msk.bf16.gmra.mxu3 %vm271_vm1, %v3348_v7 }
  0x89   : > { %2581 = vmatmul.msk.bf16.gmra.mxu2 %vm271_vm1, %v3378_v4 }
  0x8f   : > { %2574 = vmatmul.msk.bf16.gmra.mxu0 %vm271_vm1, %v3387_v43 }
  0x90   : > { %2578 = vmatmul.msk.bf16.gmra.mxu1 %vm271_vm1, %v3391_v20 }
  0x91   : > { %2586 = vmatmul.msk.bf16.gmra.mxu3 %vm271_vm1, %v3403_v62 }
  0x99   : > { %2582 = vmatmul.msk.bf16.gmra.mxu2 %vm271_vm1, %v3419_v56  ;;  %v1201_v56 = vrot.slane %v1199_v29, 5  ;;  %v997_v29 = vshrl.u32 %v3406_v28, 16 }
  0x9c   : > { %v297_v58 = vpop.f32.mrf.mxu0 }
  0x9d   : > { %v361_v61 = vpop.f32.mrf.mxu1 }
  0x9e   : > { %v362_v21 = vadd.f32 %v361_v61, %v297_v58  ;;  %v1182_v61 = vshrl.u32 %v3052_v46, 16 }
  0x9f   : > { %2587 = vmatmul.msk.bf16.vlgmr.msra.gmra.mxu0 %vm271_vm1, %v3067_v55 }
  0xa0   : > { %2591 = vmatmul.msk.bf16.vlgmr.msra.gmra.mxu1 %vm271_vm1, %v3018_v0  ;;  %1589 = vmatpush.bf16.msra.mxu0 %v2929_v13  ;;  %v1185_v0 = vshll.u32 %v3052_v46, 16  ;;  %v1184_v44 = vrot.slane %v1182_v61, 4 }
  0xa1   : > { %1657 = vmatpush.bf16.msra.mxu1 %v3198_v25  ;;  %2599 = vmatmul.msk.bf16.vlgmr.msra.gmra.mxu3 %vm271_vm1, %v1245_v49  ;;  %v1180_v49 = vsel %vm2990_vm4, %v1175_v16, %v1179_v51 }
  0xa2   : > { %1731 = vmatpush.bf16.msra.mxu3 %v2893_v3  ;;  %v1187_v37 = vrot.slane %v1185_v0, 5  ;;  %v1202_v0 = vor.u32 %v1201_v56, %v1198_v30  ;;  %v1376_v30 = vshll.u32 %v3207_v36, 16  ;;  %v1390_v56 = vshll.u32 %v3190_v59, 16 }
  0xa4   : > { %v299_v11 = vpop.f32.mrf.mxu0  ;;  %v604_v58 = vpop.f32.mrf.mxu3  ;;  %v1188_v51 = vor.u32 %v1187_v37, %v1184_v44  ;;  %v1203_v44 = vrot.slane %v1202_v0, 4  ;;  %v1227_v0 = vshll.u32 %v3133_v10, 16 }
  0xa5   : > { %v363_v19 = vpop.f32.mrf.mxu1 }
  0xa6   : > { %v364_v38 = vadd.f32 %v363_v19, %v299_v11  ;;  %v3442_v19 = vunpack.c.l.b16 %v1180_v49  ;;  %v1000_v49 = vshll.u32 %v3406_v28, 16 }
  0xa8   : > { %v1246_v50 = vpack.c.b16 %v3442_v19, %v1239_v1  ;;  %v1002_v37 = vrot.slane %v1000_v49, 5  ;;  %v1392_v49 = vrot.slane %v1390_v56, 5 }
  0xa9   : > { %2595 = vmatmul.msk.bf16.vlgmr.msra.gmra.mxu2 %vm271_vm1, %v2960_v24  ;;  %v1191_v24 = vshll.u32 %v197_v47, 16 }
  0xaa   : > { %1702 = vmatpush.bf16.msra.mxu2 %v2890_v2 }
  0xab   : > { %v1193_v1 = vrot.slane %v1191_v24, 5  ;;  %v187_v24 = vld [vmem:[%s2937_s26 + $0x44] sm:$0x1] }
  0xac   : > { %v302_v11 = vpop.f32.mrf.mxu0  ;;  %v606_v16 = vpop.f32.mrf.mxu3  ;;  %v1006_v25 = vshll.u32 %v187_v24, 16 }
  0xad   : > { %v366_v46 = vpop.f32.mrf.mxu1  ;;  %v532_v54 = vpop.f32.mrf.mxu2 }
  0xae   : > { %v3446_v4 = vadd.f32 %v366_v46, %v302_v11  ;;  %v552_v61 = vadd.f32 %v532_v54, %v362_v21  ;;  %v1373_v46 = vshrl.u32 %v3207_v36, 16  ;;  %v1207_v21 = vrot.slane %v1205_v39, 5 }
  0xaf   : > { %2588 = vmatmul.msk.bf16.gmra.mxu0 %vm271_vm1, %v3440_v22  ;;  %v1210_v54 = vshrl.u32 %v3124_v35, 16  ;;  %v3478_v22 = vpack.c.b16 %v3204_v63, %v3136_v18  ;;  %v203_v18 = vld [vmem:[%s2937_s26 + $0x84] sm:$0x1] }
  0xb0   : > { %2592 = vmatmul.msk.bf16.gmra.mxu1 %vm271_vm1, %v3076_v14  ;;  %v3458_v11 = vadd.f32 %v604_v58, %v552_v61  ;;  %v1189_v14 = vrot.slane %v1188_v51, 4  ;;  %v999_v58 = vrot.slane %v997_v29, 4  ;;  %v1224_v51 = vshrl.u32 %v3133_v10, 16 }
  0xb1   : > { %2600 = vmatmul.msk.bf16.gmra.mxu3 %vm271_vm1, %v1246_v50  ;;  %v1213_v50 = vshll.u32 %v3124_v35, 16  ;;  %v1375_v59 = vrot.slane %v1373_v46, 4  ;;  %v1389_v29 = vrot.slane %v1387_v26, 4  ;;  %v201_v26 = vld [vmem:[%s2937_s26 + $0x7c] sm:$0x1] }
  0xb2   : > { %v1194_v39 = vsel %vm2990_vm4, %v1189_v14, %v1193_v1  ;;  %v1003_v35 = vor.u32 %v1002_v37, %v999_v58  ;;  %v1226_v46 = vrot.slane %v1224_v51, 4  ;;  %v1219_v24 = vshll.u32 %v201_v26, 16 }
  0xb3   : > { %v3482_v1 = vunpack.c.l.b16 %v1194_v39  ;;  %v1393_v58 = vor.u32 %v1392_v49, %v1389_v29  ;;  %v1233_v39 = vshll.u32 %v203_v18, 16  ;;  %v225_v29 = vld [vmem:[%s2937_s26 + $0xdc] sm:$0x1] }
  0xb4   : > { %v304_v3 = vpop.f32.mrf.mxu0  ;;  %v609_v47 = vpop.f32.mrf.mxu3 }
  0xb5   : > { %v368_v27 = vpop.f32.mrf.mxu1  ;;  %v534_v61 = vpop.f32.mrf.mxu2 }
  0xb6   : > { %v3465_v28 = vadd.f32 %v368_v27, %v304_v3  ;;  %v553_v36 = vadd.f32 %v534_v61, %v364_v38  ;;  %v1208_v3 = vsel %vm2990_vm4, %v1203_v44, %v1207_v21  ;;  %v1378_v27 = vrot.slane %v1376_v30, 5 }
  0xb7   : > { %v1212_v38 = vrot.slane %v1210_v54, 4  ;;  %v1215_v61 = vrot.slane %v1213_v50, 5  ;;  %v3484_v44 = vunpack.c.l.b16 %v1208_v3  ;;  %v1229_v21 = vrot.slane %v1227_v0, 5 }
  0xb8   : > { %v3480_v10 = vadd.f32 %v606_v16, %v553_v36  ;;  %v1379_v63 = vor.u32 %v1378_v27, %v1375_v59  ;;  %v1004_v16 = vrot.slane %v1003_v35, 4  ;;  %v1008_v54 = vrot.slane %v1006_v25, 5  ;;  %v227_v25 = vld [vmem:[%s2937_s26 + $0xe4] sm:$0x1] }
  0xb9   : > { %2596 = vmatmul.msk.bf16.gmra.mxu2 %vm271_vm1, %v3011_v60  ;;  %v1247_v60 = vpack.c.b16 %v3484_v44, %v3482_v1  ;;  %v1216_v51 = vor.u32 %v1215_v61, %v1212_v38  ;;  %v1230_v36 = vor.u32 %v1229_v21, %v1226_v46  ;;  %v1394_v59 = vrot.slane %v1393_v58, 4 }
  0xba   : > { %v1380_v3 = vrot.slane %v1379_v63, 4  ;;  %v1009_v27 = vsel %vm2990_vm4, %v1004_v16, %v1008_v54  ;;  %v1382_v38 = vshll.u32 %v225_v29, 16  ;;  %v1396_v61 = vshll.u32 %v227_v25, 16 }
  0xbb   : > { %v1217_v35 = vrot.slane %v1216_v51, 4  ;;  %v1235_v46 = vrot.slane %v1233_v39, 5  ;;  %v1010_v58 = vunpack.c.l.b16 %v1009_v27 }
  0xbc   : > { %v307_v14 = vpop.f32.mrf.mxu0  ;;  %v611_v37 = vpop.f32.mrf.mxu3  ;;  %v1384_v26 = vrot.slane %v1382_v38, 5  ;;  %v1398_v18 = vrot.slane %v1396_v61, 5 }
  0xbd   : > { %v371_v30 = vpop.f32.mrf.mxu1  ;;  %v537_v50 = vpop.f32.mrf.mxu2 }
  0xbe   : > { %v372_v56 = vadd.f32 %v371_v30, %v307_v14  ;;  %v554_v0 = vadd.f32 %v537_v50, %v3446_v4  ;;  %v1221_v14 = vrot.slane %v1219_v24, 5  ;;  %v1231_v4 = vrot.slane %v1230_v36, 4 }
  0xbf   : > { %2589 = vmatmul.msk.bf16.gmra.mxu0 %vm271_vm1, %v3478_v22  ;;  %v1385_v54 = vsel %vm2990_vm4, %v1380_v3, %v1384_v26  ;;  %v1399_v50 = vsel %vm2990_vm4, %v1394_v59, %v1398_v18  ;;  %v3516_v36 = vpack.c.b16 %v1010_v58, %v3212_v40  ;;  %v1401_v3 = vshrl.u32 %v3195_v6, 16 }
  0xc0   : > { %2593 = vmatmul.msk.bf16.gmra.mxu1 %vm271_vm1, %v3149_v34  ;;  %v3501_v49 = vadd.f32 %v609_v47, %v554_v0  ;;  %v1222_v47 = vsel %vm2990_vm4, %v1217_v35, %v1221_v14  ;;  %v1236_v51 = vsel %vm2990_vm4, %v1231_v4, %v1235_v46  ;;  %v1484_v24 = vunpack.c.l.b16 %v1385_v54  ;;  %v229_v4 = vld [vmem:[%s2937_s26 + $0xec] sm:$0x1] }
  0xc1   : > { %2601 = vmatmul.msk.bf16.gmra.mxu3 %vm271_vm1, %v1247_v60  ;;  %v3513_v0 = vunpack.c.l.b16 %v1399_v50  ;;  %v1404_v59 = vshll.u32 %v3195_v6, 16  ;;  %v3525_v29 = vunpack.c.l.b16 %v1222_v47  ;;  %v3527_v25 = vunpack.c.l.b16 %v1236_v51 }
  0xc2   : > { %v1410_v58 = vshll.u32 %v229_v4, 16 }
  0xc3   : > { %4299 = vst [vmem:[#allocation37_spill] sm:$0xff] %v3513_v0  ;;  %v3519_v39 = vpack.c.b16 %v3513_v0, %v1484_v24  ;;  %v1406_v38 = vrot.slane %v1404_v59, 5  ;;  %v1248_v6 = vpack.c.b16 %v3527_v25, %v3525_v29  ;;  %v4303_v59 = vld [vmem:[#allocation19_spill] sm:$0xff]  ;;  %v233_v0 = vld [vmem:[%s2937_s26 + $0xfc] sm:$0x1] }
  0xc4   : > { %v309_v34 = vpop.f32.mrf.mxu0  ;;  %v614_v63 = vpop.f32.mrf.mxu3  ;;  %v1412_v50 = vrot.slane %v1410_v58, 5 }
  0xc5   : > { %v373_v30 = vpop.f32.mrf.mxu1  ;;  %v539_v16 = vpop.f32.mrf.mxu2  ;;  %4300 = vst [vmem:[#allocation38_spill] sm:$0xff] %v3519_v39 }
  0xc6   : > { %v374_v21 = vadd.f32 %v373_v30, %v309_v34  ;;  %v555_v60 = vadd.f32 %v539_v16, %v3465_v28  ;;  %v4301_v34 = vld [vmem:[#allocation15_spill] sm:$0xff] }
  0xc8   : > { %v3521_v27 = vadd.f32 %v611_v37, %v555_v60  ;;  %v1403_v37 = vrot.slane %v1401_v3, 4 }
  0xc9   : > { %2597 = vmatmul.msk.bf16.gmra.mxu2 %vm271_vm1, %v4301_v34 }
  0xca   : > { %v1407_v18 = vor.u32 %v1406_v38, %v1403_v37 }
  0xcc   : > { %v312_v28 = vpop.f32.mrf.mxu0  ;;  %v616_v14 = vpop.f32.mrf.mxu3  ;;  %v1408_v54 = vrot.slane %v1407_v18, 4 }
  0xcd   : > { %v376_v40 = vpop.f32.mrf.mxu1  ;;  %v542_v61 = vpop.f32.mrf.mxu2 }
  0xce   : > { %v377_v35 = vadd.f32 %v376_v40, %v312_v28  ;;  %v556_v30 = vadd.f32 %v542_v61, %v372_v56 }
  0xcf   : > { %2590 = vmatmul.msk.bf16.gmra.mxu0 %vm271_vm1, %v3516_v36 }
  0xd0   : > { %2594 = vmatmul.msk.bf16.gmra.mxu1 %vm271_vm1, %v3224_v41  ;;  %v3538_v46 = vadd.f32 %v614_v63, %v556_v30  ;;  %v1413_v41 = vsel %vm2990_vm4, %v1408_v54, %v1412_v50  ;;  %v231_v50 = vld [vmem:[%s2937_s26 + $0xf4] sm:$0x1] }
  0xd1   : > { %2602 = vmatmul.msk.bf16.gmra.mxu3 %vm271_vm1, %v1248_v6  ;;  %v3543_v3 = vunpack.c.l.b16 %v1413_v41  ;;  %v1418_v6 = vshll.u32 %v3253_v23, 16 }
  0xd3   : > { %4302 = vst [vmem:[#allocation15_spill] sm:$0xff] %v3543_v3 }
  0xd4   : > { %v314_v26 = vpop.f32.mrf.mxu0  ;;  %v619_v60 = vpop.f32.mrf.mxu3 }
  0xd5   : > { %v378_v16 = vpop.f32.mrf.mxu1  ;;  %v544_v51 = vpop.f32.mrf.mxu2 }
  0xd6   : > { %v379_v47 = vadd.f32 %v378_v16, %v314_v26  ;;  %v557_v24 = vadd.f32 %v544_v51, %v374_v21  ;;  %v1420_v16 = vrot.slane %v1418_v6, 5 }
  0xd8   : > { %v3545_v56 = vadd.f32 %v616_v14, %v557_v24  ;;  %v4304_v14 = vld [vmem:[#allocation6_spill] sm:$0xff] }
  0xd9   : > { %2598 = vmatmul.msk.bf16.gmra.mxu2 %vm271_vm1, %v4303_v59 }
  0xdc   : > { %v676_v63 = vpop.f32.mrf.mxu0  ;;  %v621_v37 = vpop.f32.mrf.mxu3 }
  0xdd   : > { %v696_v28 = vadd.f32 %v676_v63, %v3458_v11  ;;  %v852_v34 = vpop.f32.mrf.mxu1  ;;  %v547_v21 = vpop.f32.mrf.mxu2  ;;  %v1415_v11 = vshrl.u32 %v3253_v23, 16  ;;  %v1424_v63 = vshll.u32 %v231_v50, 16  ;;  %v4306_v50 = vld [vmem:[#allocation26_spill] sm:$0xff] }
  0xde   : > { %v558_v61 = vadd.f32 %v547_v21, %v377_v35 }
  0xdf   : > { %v872_v38 = vadd.f32 %v852_v34, %v696_v28  ;;  %2603 = vmatmul.msk.bf16.vlgmr.msrb.gmra.mxu0 %vm271_vm1, %v3227_v32  ;;  %v1417_v58 = vrot.slane %v1415_v11, 4  ;;  %v1426_v21 = vrot.slane %v1424_v63, 5 }
  0xe0   : > { %2607 = vmatmul.msk.bf16.vlgmr.msrb.gmra.mxu1 %vm271_vm1, %v3231_v42  ;;  %1760 = vmatpush.bf16.msrb.mxu0 %v4304_v14  ;;  %v3560_v30 = vadd.f32 %v619_v60, %v558_v61  ;;  %v4305_v61 = vld [vmem:[#allocation8_spill] sm:$0xff] }
  0xe1   : > { %1797 = vmatpush.bf16.msrb.mxu1 %v2902_v5  ;;  %2615 = vmatmul.msk.bf16.vlgmr.msrb.gmra.mxu3 %vm271_vm1, %v3245_v53  ;;  %v1421_v24 = vor.u32 %v1420_v16, %v1417_v58 }
  0xe2   : > { %1871 = vmatpush.bf16.msrb.mxu3 %v2942_v15 }
  0xe3   : > { %v1422_v34 = vrot.slane %v1421_v24, 4 }
  0xe4   : > { %v678_v4 = vpop.f32.mrf.mxu0  ;;  %v968_v35 = vpop.f32.mrf.mxu3 }
  0xe5   : > { %v697_v26 = vadd.f32 %v678_v4, %v3480_v10  ;;  %v854_v18 = vpop.f32.mrf.mxu1  ;;  %v549_v51 = vpop.f32.mrf.mxu2  ;;  %v1427_v58 = vsel %vm2990_vm4, %v1422_v34, %v1426_v21 }
  0xe6   : > { %v559_v41 = vadd.f32 %v549_v51, %v379_v47  ;;  %v3588_v24 = vunpack.c.l.b16 %v1427_v58 }
  0xe7   : > { %v873_v54 = vadd.f32 %v854_v18, %v697_v26  ;;  %v1432_v26 = vshll.u32 %v3301_v57, 16  ;;  %v1446_v18 = vshll.u32 %v3304_v8, 16 }
  0xe8   : > { %v3567_v60 = vadd.f32 %v621_v37, %v559_v41  ;;  %v1429_v37 = vshrl.u32 %v3301_v57, 16  ;;  %4307 = vst [vmem:[#allocation19_spill] sm:$0xff] %v3588_v24  ;;  %v3594_v21 = vpack.c.b16 %v3588_v24, %v3543_v3 }
  0xe9   : > { %2611 = vmatmul.msk.bf16.vlgmr.msrb.gmra.mxu2 %vm271_vm1, %v3519_v39  ;;  %v235_v39 = vld [vmem:[%s2937_s26 + $0x104] sm:$0x1] }
  0xea   : > { %1834 = vmatpush.bf16.msrb.mxu2 %v4305_v61  ;;  %v1431_v63 = vrot.slane %v1429_v37, 4  ;;  %4308 = vst [vmem:[#allocation6_spill] sm:$0xff] %v3594_v21 }
  0xec   : > { %v681_v59 = vpop.f32.mrf.mxu0  ;;  %v970_v11 = vpop.f32.mrf.mxu3 }
  0xed   : > { %v698_v10 = vadd.f32 %v681_v59, %v3501_v49  ;;  %v857_v28 = vpop.f32.mrf.mxu1  ;;  %v910_v47 = vpop.f32.mrf.mxu2  ;;  %v1443_v49 = vshrl.u32 %v3304_v8, 16  ;;  %v1434_v59 = vrot.slane %v1432_v26, 5  ;;  %v1438_v8 = vshll.u32 %v233_v0, 16 }
  0xee   : > { %v930_v4 = vadd.f32 %v910_v47, %v872_v38 }
  0xef   : > { %v874_v6 = vadd.f32 %v857_v28, %v698_v10  ;;  %2604 = vmatmul.msk.bf16.gmra.mxu0 %vm271_vm1, %v3274_v48  ;;  %v1445_v10 = vrot.slane %v1443_v49, 4  ;;  %v1448_v28 = vrot.slane %v1446_v18, 5 }
  0xf0   : > { %2608 = vmatmul.msk.bf16.gmra.mxu1 %vm271_vm1, %v3277_v52  ;;  %v3583_v16 = vadd.f32 %v968_v35, %v930_v4  ;;  %v1435_v4 = vor.u32 %v1434_v59, %v1431_v63 }
  0xf1   : > { %2616 = vmatmul.msk.bf16.gmra.mxu3 %vm271_vm1, %v4306_v50 }
  0xf2   : > { %v1436_v18 = vrot.slane %v1435_v4, 4 }
  0xf4   : > { %v683_v51 = vpop.f32.mrf.mxu0  ;;  %v973_v47 = vpop.f32.mrf.mxu3 }
  0xf5   : > { %v699_v41 = vadd.f32 %v683_v51, %v3521_v27  ;;  %v859_v38 = vpop.f32.mrf.mxu1  ;;  %v912_v34 = vpop.f32.mrf.mxu2  ;;  %v1449_v27 = vor.u32 %v1448_v28, %v1445_v10  ;;  %v1452_v51 = vshll.u32 %v235_v39, 16  ;;  %v1457_v39 = vshrl.u32 %v3357_v9, 16 }
  0xf6   : > { %v931_v35 = vadd.f32 %v912_v34, %v873_v54 }
  0xf7   : > { %v875_v40 = vadd.f32 %v859_v38, %v699_v41  ;;  %v1440_v41 = vrot.slane %v1438_v8, 5  ;;  %v1450_v54 = vrot.slane %v1449_v27, 4  ;;  %v1454_v38 = vrot.slane %v1452_v51, 5 }
  0xf8   : > { %v3596_v58 = vadd.f32 %v970_v11, %v931_v35  ;;  %v1460_v11 = vshll.u32 %v3357_v9, 16  ;;  %v1474_v8 = vshll.u32 %v3360_v12, 16 }
  0xf9   : > { %2612 = vmatmul.msk.bf16.gmra.mxu2 %vm271_vm1, %v3594_v21  ;;  %v1441_v59 = vsel %vm2990_vm4, %v1436_v18, %v1440_v41  ;;  %v1455_v10 = vsel %vm2990_vm4, %v1450_v54, %v1454_v38  ;;  %v237_v54 = vld [vmem:[%s2937_s26 + $0x10c] sm:$0x1] }
  0xfa   : > { %v3618_v27 = vunpack.c.l.b16 %v1441_v59  ;;  %v3620_v51 = vunpack.c.l.b16 %v1455_v10  ;;  %v1476_v18 = vrot.slane %v1474_v8, 5 }
  0xfc   : > { %v686_v37 = vpop.f32.mrf.mxu0  ;;  %v975_v34 = vpop.f32.mrf.mxu3  ;;  %4309 = vst [vmem:[#allocation8_spill] sm:$0xff] %v3618_v27  ;;  %v3626_v3 = vpack.c.b16 %v3620_v51, %v3618_v27  ;;  %v205_v27 = vld [vmem:[%s2937_s26 + $0x8c] sm:$0x1] }
  0xfd   : > { %v700_v26 = vadd.f32 %v686_v37, %v3538_v46  ;;  %v862_v49 = vpop.f32.mrf.mxu1  ;;  %v915_v0 = vpop.f32.mrf.mxu2  ;;  %v1471_v46 = vshrl.u32 %v3360_v12, 16  ;;  %4310 = vst [vmem:[#allocation26_spill] sm:$0xff] %v3620_v51  ;;  %v1459_v37 = vrot.slane %v1457_v39, 4 }
  0xfe   : > { %v932_v63 = vadd.f32 %v915_v0, %v874_v6 }
  0xff   : > { %v876_v24 = vadd.f32 %v862_v49, %v700_v26  ;;  %2605 = vmatmul.msk.bf16.gmra.mxu0 %vm271_vm1, %v3330_v17  ;;  %v1462_v26 = vrot.slane %v1460_v11, 5  ;;  %v1473_v49 = vrot.slane %v1471_v46, 4 }
 0x100   : > { %2609 = vmatmul.msk.bf16.gmra.mxu1 %vm271_vm1, %v3334_v33  ;;  %v3613_v28 = vadd.f32 %v973_v47, %v932_v63  ;;  %v239_v47 = vld [vmem:[%s2937_s26 + $0x114] sm:$0x1] }
 0x101   : > { %2617 = vmatmul.msk.bf16.gmra.mxu3 %vm271_vm1, %v3348_v7  ;;  %v1477_v59 = vor.u32 %v1476_v18, %v1473_v49  ;;  %v1480_v21 = vshll.u32 %v239_v47, 16 }
 0x104   : > { %v688_v35 = vpop.f32.mrf.mxu0  ;;  %v978_v41 = vpop.f32.mrf.mxu3 }
 0x105   : > { %v701_v6 = vadd.f32 %v688_v35, %v3545_v56  ;;  %v864_v4 = vpop.f32.mrf.mxu1  ;;  %v917_v38 = vpop.f32.mrf.mxu2  ;;  %v1463_v56 = vor.u32 %v1462_v26, %v1459_v37  ;;  %v1466_v35 = vshll.u32 %v237_v54, 16 }
 0x106   : > { %v933_v63 = vadd.f32 %v917_v38, %v875_v40  ;;  %v1478_v40 = vrot.slane %v1477_v59, 4 }
 0x107   : > { %v877_v0 = vadd.f32 %v864_v4, %v701_v6  ;;  %v1464_v8 = vrot.slane %v1463_v56, 4  ;;  %v1468_v6 = vrot.slane %v1466_v35, 5  ;;  %v1482_v4 = vrot.slane %v1480_v21, 5 }
 0x108   : > { %v3628_v10 = vadd.f32 %v975_v34, %v933_v63 }
 0x109   : > { %2613 = vmatmul.msk.bf16.gmra.mxu2 %vm271_vm1, %v3626_v3  ;;  %v1469_v26 = vsel %vm2990_vm4, %v1464_v8, %v1468_v6 }
 0x10a   : > { %v3644_v47 = vunpack.c.l.b16 %v1469_v26 }
 0x10c   : > { %v691_v39 = vpop.f32.mrf.mxu0  ;;  %v980_v38 = vpop.f32.mrf.mxu3  ;;  %4311 = vst [vmem:[#allocation39_spill] sm:$0xff] %v3644_v47 }
 0x10d   : > { %v702_v11 = vadd.f32 %v691_v39, %v3560_v30  ;;  %v867_v46 = vpop.f32.mrf.mxu1  ;;  %v920_v37 = vpop.f32.mrf.mxu2  ;;  %v1483_v30 = vsel %vm2990_vm4, %v1478_v40, %v1482_v4 }
 0x10e   : > { %v934_v34 = vadd.f32 %v920_v37, %v876_v24  ;;  %v3646_v63 = vunpack.c.l.b16 %v1483_v30 }
 0x10f   : > { %v878_v51 = vadd.f32 %v867_v46, %v702_v11  ;;  %2606 = vmatmul.msk.bf16.gmra.mxu0 %vm271_vm1, %v3387_v43 }
 0x110   : > { %2610 = vmatmul.msk.bf16.gmra.mxu1 %vm271_vm1, %v3391_v20  ;;  %v992_v49 = vadd.f32 %v978_v41, %v934_v34  ;;  %4312 = vst [vmem:[#allocation40_spill] sm:$0xff] %v3646_v63  ;;  %v3650_v39 = vpack.c.b16 %v3646_v63, %v3644_v47 }
 0x111   : > { %2618 = vmatmul.msk.bf16.gmra.mxu3 %vm271_vm1, %v3403_v62 }
 0x114   : > { %v693_v21 = vpop.f32.mrf.mxu0  ;;  %v983_v56 = vpop.f32.mrf.mxu3 }
 0x115   : > { %v703_v18 = vadd.f32 %v693_v21, %v3567_v60  ;;  %v869_v54 = vpop.f32.mrf.mxu1  ;;  %v922_v35 = vpop.f32.mrf.mxu2 }
 0x116   : > { %v935_v59 = vadd.f32 %v922_v35, %v877_v0  ;;  %v4313_v0 = vld [vmem:[#allocation7_spill] sm:$0xff]  ;;  %v4316_v35 = vld [vmem:[#allocation21_spill] sm:$0xff] }
 0x117   : > { %v879_v24 = vadd.f32 %v869_v54, %v703_v18  ;;  %v3677_v54 = vpack.c.b16 %v3482_v1, %v3442_v19 }
 0x118   : > { %v3652_v41 = vadd.f32 %v980_v38, %v935_v59  ;;  %v4314_v38 = vld [vmem:[#allocation9_spill] sm:$0xff]  ;;  %v4317_v59 = vld [vmem:[#allocation36_spill] sm:$0xff] }
 0x119   : > { %2614 = vmatmul.msk.bf16.gmra.mxu2 %vm271_vm1, %v3650_v39  ;;  %4315 = vst [vmem:[#allocation7_spill] sm:$0xff] %v3677_v54 }
 0x11c   : > { %v1039_v11 = vpop.f32.mrf.mxu0  ;;  %v985_v8 = vpop.f32.mrf.mxu3 }
 0x11d   : > { %v3657_v60 = vadd.f32 %v1039_v11, %v3583_v16  ;;  %v1076_v46 = vpop.f32.mrf.mxu1  ;;  %v925_v6 = vpop.f32.mrf.mxu2  ;;  %v4318_v11 = vld [vmem:[#allocation12_spill] sm:$0xff] }
 0x11e   : > { %v936_v40 = vadd.f32 %v925_v6, %v878_v51 }
 0x11f   : > { %2619 = vmatmul.msk.bf16.vlgmr.msra.gmra.mxu0 %vm271_vm1, %v3067_v55 }
 0x120   : > { %2623 = vmatmul.msk.bf16.vlgmr.msra.gmra.mxu1 %vm271_vm1, %v3413_v31  ;;  %1926 = vmatpush.bf16.msra.mxu0 %v4313_v0  ;;  %v3665_v4 = vadd.f32 %v983_v56, %v936_v40 }
 0x121   : > { %1981 = vmatpush.bf16.msra.mxu1 %v2929_v13  ;;  %2631 = vmatmul.msk.bf16.vlgmr.msra.gmra.mxu3 %vm271_vm1, %v4314_v38 }
 0x122   : > { %2094 = vmatpush.bf16.msra.mxu3 %v2890_v2 }
 0x124   : > { %v1041_v16 = vpop.f32.mrf.mxu0  ;;  %v1270_v26 = vpop.f32.mrf.mxu3 }
 0x125   : > { %v3670_v37 = vadd.f32 %v1041_v16, %v3596_v58  ;;  %v1078_v34 = vpop.f32.mrf.mxu1  ;;  %v927_v30 = vpop.f32.mrf.mxu2 }
 0x126   : > { %v937_v21 = vadd.f32 %v927_v30, %v879_v24 }
 0x128   : > { %v3673_v18 = vadd.f32 %v985_v8, %v937_v21 }
 0x129   : > { %2627 = vmatmul.msk.bf16.vlgmr.msra.gmra.mxu2 %vm271_vm1, %v3227_v32 }
 0x12a   : > { %2049 = vmatpush.bf16.msra.mxu2 %v4316_v35 }
 0x12c   : > { %v1044_v51 = vpop.f32.mrf.mxu0  ;;  %v1272_v2 = vpop.f32.mrf.mxu3 }
 0x12d   : > { %v3682_v56 = vadd.f32 %v1044_v51, %v3613_v28  ;;  %v1081_v58 = vpop.f32.mrf.mxu1  ;;  %v1105_v24 = vpop.f32.mrf.mxu2  ;;  %v4319_v28 = vld [vmem:[#allocation34_spill] sm:$0xff] }
 0x12e   : > { %v1106_v19 = vadd.f32 %v1105_v24, %v1076_v46  ;;  %v1620_v6 = vshrl.u32 %v4319_v28, 16  ;;  %v1623_v40 = vshll.u32 %v4319_v28, 16  ;;  %v3699_v24 = vpack.c.b16 %v3525_v29, %v3484_v44 }
 0x12f   : > { %2620 = vmatmul.msk.bf16.gmra.mxu0 %vm271_vm1, %v4317_v59 }
 0x130   : > { %2624 = vmatmul.msk.bf16.gmra.mxu1 %vm271_vm1, %v3677_v54  ;;  %v1290_v1 = vadd.f32 %v1270_v26, %v1106_v19  ;;  %v1622_v51 = vrot.slane %v1620_v6, 4  ;;  %v1625_v63 = vrot.slane %v1623_v40, 5  ;;  %4320 = vst [vmem:[#allocation9_spill] sm:$0xff] %v3699_v24  ;;  %v4321_v6 = vld [vmem:[#allocation16_spill] sm:$0xff] }
 0x131   : > { %2632 = vmatmul.msk.bf16.gmra.mxu3 %vm271_vm1, %v4318_v11 }
 0x132   : > { %v1626_v11 = vor.u32 %v1625_v63, %v1622_v51 }
 0x134   : > { %v1046_v8 = vpop.f32.mrf.mxu0  ;;  %v1275_v30 = vpop.f32.mrf.mxu3 }
 0x135   : > { %v3694_v38 = vadd.f32 %v1046_v8, %v3628_v10  ;;  %v1083_v16 = vpop.f32.mrf.mxu1  ;;  %v1107_v21 = vpop.f32.mrf.mxu2  ;;  %v1629_v8 = vshll.u32 %v205_v27, 16 }
 0x136   : > { %v1108_v47 = vadd.f32 %v1107_v21, %v1078_v34 }
 0x137   : > { %v1631_v44 = vrot.slane %v1629_v8, 5 }
 0x138   : > { %v1291_v46 = vadd.f32 %v1272_v2, %v1108_v47  ;;  %v1627_v2 = vrot.slane %v1626_v11, 4 }
 0x139   : > { %2628 = vmatmul.msk.bf16.gmra.mxu2 %vm271_vm1, %v3274_v48 }
 0x13a   : > { %v1632_v63 = vsel %vm2990_vm4, %v1627_v2, %v1631_v44 }
 0x13c   : > { %v1049_v26 = vpop.f32.mrf.mxu0  ;;  %v1277_v28 = vpop.f32.mrf.mxu3 }
 0x13d   : > { %v3703_v19 = vadd.f32 %v1049_v26, %v992_v49  ;;  %v1086_v10 = vpop.f32.mrf.mxu1  ;;  %v1110_v34 = vpop.f32.mrf.mxu2  ;;  %v1633_v26 = vunpack.c.l.b16 %v1632_v63 }
 0x13e   : > { %v1111_v47 = vadd.f32 %v1110_v34, %v1081_v58 }
 0x13f   : > { %2621 = vmatmul.msk.bf16.gmra.mxu0 %vm271_vm1, %v3478_v22  ;;  %v3717_v11 = vpack.c.b16 %v1633_v26, %v3527_v25 }
 0x140   : > { %2625 = vmatmul.msk.bf16.gmra.mxu1 %vm271_vm1, %v3699_v24  ;;  %v1292_v29 = vadd.f32 %v1275_v30, %v1111_v47 }
 0x141   : > { %2633 = vmatmul.msk.bf16.gmra.mxu3 %vm271_vm1, %v4321_v6 }
 0x144   : > { %v1051_v49 = vpop.f32.mrf.mxu0  ;;  %v1280_v21 = vpop.f32.mrf.mxu3 }
 0x145   : > { %v3712_v40 = vadd.f32 %v1051_v49, %v3652_v41  ;;  %v1088_v27 = vpop.f32.mrf.mxu1  ;;  %v1112_v51 = vpop.f32.mrf.mxu2 }
 0x146   : > { %v1113_v54 = vadd.f32 %v1112_v51, %v1083_v16 }
 0x148   : > { %v1293_v24 = vadd.f32 %v1277_v28, %v1113_v54  ;;  %v4322_v28 = vld [vmem:[#allocation20_spill] sm:$0xff] }
 0x149   : > { %2629 = vmatmul.msk.bf16.gmra.mxu2 %vm271_vm1, %v3330_v17 }
 0x14c   : > { %v1054_v58 = vpop.f32.mrf.mxu0  ;;  %v1282_v8 = vpop.f32.mrf.mxu3 }
 0x14d   : > { %v3722_v30 = vadd.f32 %v1054_v58, %v3665_v4  ;;  %v1091_v41 = vpop.f32.mrf.mxu1  ;;  %v1115_v34 = vpop.f32.mrf.mxu2 }
 0x14e   : > { %v1116_v54 = vadd.f32 %v1115_v34, %v1086_v10  ;;  %v4323_v34 = vld [vmem:[#allocation25_spill] sm:$0xff] }
 0x14f   : > { %2622 = vmatmul.msk.bf16.gmra.mxu0 %vm271_vm1, %v3516_v36 }
 0x150   : > { %2626 = vmatmul.msk.bf16.gmra.mxu1 %vm271_vm1, %v3717_v11  ;;  %v1294_v16 = vadd.f32 %v1280_v21, %v1116_v54 }
 0x151   : > { %2634 = vmatmul.msk.bf16.gmra.mxu3 %vm271_vm1, %v4322_v28 }
 0x154   : > { %v1056_v25 = vpop.f32.mrf.mxu0  ;;  %v1285_v2 = vpop.f32.mrf.mxu3 }
 0x155   : > { %v3731_v47 = vadd.f32 %v1056_v25, %v3673_v18  ;;  %v1093_v4 = vpop.f32.mrf.mxu1  ;;  %v1117_v44 = vpop.f32.mrf.mxu2  ;;  %v4324_v18 = vld [vmem:[#allocation5_spill] sm:$0xff] }
 0x156   : > { %v1118_v6 = vadd.f32 %v1117_v44, %v1088_v27 }
 0x158   : > { %v1295_v49 = vadd.f32 %v1282_v8, %v1118_v6 }
 0x159   : > { %2630 = vmatmul.msk.bf16.gmra.mxu2 %vm271_vm1, %v3387_v43 }
 0x15c   : > { %v1307_v63 = vpop.f32.mrf.mxu0  ;;  %v1287_v10 = vpop.f32.mrf.mxu3 }
 0x15d   : > { %v1327_v51 = vadd.f32 %v1307_v63, %v1290_v1  ;;  %v1344_v26 = vpop.f32.mrf.mxu1  ;;  %v1120_v58 = vpop.f32.mrf.mxu2 }
 0x15e   : > { %v1121_v54 = vadd.f32 %v1120_v58, %v1091_v41 }
 0x15f   : > { %v1364_v21 = vadd.f32 %v1344_v26, %v1327_v51  ;;  %2635 = vmatmul.msk.bf16.vlgmr.msrb.gmra.mxu0 %vm271_vm1, %v3231_v42 }
 0x160   : > { %2639 = vmatmul.msk.bf16.vlgmr.msrb.gmra.mxu1 %vm271_vm1, %v4323_v34  ;;  %2123 = vmatpush.bf16.msrb.mxu0 %v4324_v18  ;;  %v1296_v27 = vadd.f32 %v1285_v2, %v1121_v54 }
 0x161   : > { %2152 = vmatpush.bf16.msrb.mxu1 %v4304_v14  ;;  %2647 = vmatmul.msk.bf16.vlgmr.msrb.gmra.mxu3 %vm271_vm1, %v3067_v55 }
 0x162   : > { %2226 = vmatpush.bf16.msrb.mxu3 %v4305_v61  ;;  %v4325_v61 = vld [vmem:[#allocation30_spill] sm:$0xff] }
 0x164   : > { %v1309_v1 = vpop.f32.mrf.mxu0  ;;  %v1554_v25 = vpop.f32.mrf.mxu3 }
 0x165   : > { %v1328_v8 = vadd.f32 %v1309_v1, %v1291_v46  ;;  %v1346_v28 = vpop.f32.mrf.mxu1  ;;  %v1122_v6 = vpop.f32.mrf.mxu2 }
 0x166   : > { %v1123_v63 = vadd.f32 %v1122_v6, %v1093_v4 }
 0x167   : > { %v1365_v44 = vadd.f32 %v1346_v28, %v1328_v8 }
 0x168   : > { %v1297_v51 = vadd.f32 %v1287_v10, %v1123_v63 }
 0x169   : > { %2643 = vmatmul.msk.bf16.vlgmr.msrb.gmra.mxu2 %vm271_vm1, %v3245_v53 }
 0x16a   : > { %2189 = vmatpush.bf16.msrb.mxu2 %v2902_v5 }
 0x16c   : > { %v1312_v26 = vpop.f32.mrf.mxu0  ;;  %v1556_v2 = vpop.f32.mrf.mxu3 }
 0x16d   : > { %v1329_v41 = vadd.f32 %v1312_v26, %v1292_v29  ;;  %v1349_v14 = vpop.f32.mrf.mxu1  ;;  %v1517_v46 = vpop.f32.mrf.mxu2 }
 0x16e   : > { %v1537_v34 = vadd.f32 %v1517_v46, %v1364_v21 }
 0x16f   : > { %v1366_v58 = vadd.f32 %v1349_v14, %v1329_v41  ;;  %2636 = vmatmul.msk.bf16.gmra.mxu0 %vm271_vm1, %v3277_v52  ;;  %v4326_v14 = vld [vmem:[#allocation33_spill] sm:$0xff] }
 0x170   : > { %2640 = vmatmul.msk.bf16.gmra.mxu1 %vm271_vm1, %v4325_v61  ;;  %v1574_v4 = vadd.f32 %v1554_v25, %v1537_v34 }
 0x171   : > { %2648 = vmatmul.msk.bf16.gmra.mxu3 %vm271_vm1, %v4317_v59 }
 0x174   : > { %v1314_v10 = vpop.f32.mrf.mxu0  ;;  %v1559_v54 = vpop.f32.mrf.mxu3 }
 0x175   : > { %v1330_v18 = vadd.f32 %v1314_v10, %v1293_v24  ;;  %v1351_v29 = vpop.f32.mrf.mxu1  ;;  %v1519_v5 = vpop.f32.mrf.mxu2 }
 0x176   : > { %v1538_v8 = vadd.f32 %v1519_v5, %v1365_v44 }
 0x177   : > { %v1367_v1 = vadd.f32 %v1351_v29, %v1330_v18 }
 0x178   : > { %v1575_v28 = vadd.f32 %v1556_v2, %v1538_v8 }
 0x179   : > { %2644 = vmatmul.msk.bf16.gmra.mxu2 %vm271_vm1, %v4306_v50 }
 0x17c   : > { %v1317_v6 = vpop.f32.mrf.mxu0  ;;  %v1561_v41 = vpop.f32.mrf.mxu3 }
 0x17d   : > { %v1331_v63 = vadd.f32 %v1317_v6, %v1294_v16  ;;  %v1354_v26 = vpop.f32.mrf.mxu1  ;;  %v1522_v25 = vpop.f32.mrf.mxu2 }
 0x17e   : > { %v1539_v24 = vadd.f32 %v1522_v25, %v1366_v58 }
 0x17f   : > { %v1368_v21 = vadd.f32 %v1354_v26, %v1331_v63  ;;  %2637 = vmatmul.msk.bf16.gmra.mxu0 %vm271_vm1, %v3334_v33  ;;  %v4327_v26 = vld [vmem:[#allocation35_spill] sm:$0xff] }
 0x180   : > { %2641 = vmatmul.msk.bf16.gmra.mxu1 %vm271_vm1, %v4326_v14  ;;  %v1576_v46 = vadd.f32 %v1559_v54, %v1539_v24 }
 0x181   : > { %2649 = vmatmul.msk.bf16.gmra.mxu3 %vm271_vm1, %v3478_v22 }
 0x184   : > { %v1319_v44 = vpop.f32.mrf.mxu0  ;;  %v1564_v34 = vpop.f32.mrf.mxu3 }
 0x185   : > { %v1332_v2 = vadd.f32 %v1319_v44, %v1295_v49  ;;  %v1356_v61 = vpop.f32.mrf.mxu1  ;;  %v1524_v10 = vpop.f32.mrf.mxu2 }
 0x186   : > { %v1540_v18 = vadd.f32 %v1524_v10, %v1367_v1 }
 0x187   : > { %v1369_v16 = vadd.f32 %v1356_v61, %v1332_v2 }
 0x188   : > { %v1577_v29 = vadd.f32 %v1561_v41, %v1540_v18 }
 0x189   : > { %2645 = vmatmul.msk.bf16.gmra.mxu2 %vm271_vm1, %v3348_v7 }
 0x18c   : > { %v1322_v5 = vpop.f32.mrf.mxu0  ;;  %v1566_v63 = vpop.f32.mrf.mxu3 }
 0x18d   : > { %v1333_v8 = vadd.f32 %v1322_v5, %v1296_v27  ;;  %v1359_v6 = vpop.f32.mrf.mxu1  ;;  %v1527_v54 = vpop.f32.mrf.mxu2 }
 0x18e   : > { %v1541_v49 = vadd.f32 %v1527_v54, %v1368_v21 }
 0x18f   : > { %v1370_v58 = vadd.f32 %v1359_v6, %v1333_v8  ;;  %2638 = vmatmul.msk.bf16.gmra.mxu0 %vm271_vm1, %v3391_v20  ;;  %v4328_v8 = vld [vmem:[#allocation11_spill] sm:$0xff]  ;;  %v4329_v6 = vld [vmem:[#allocation22_spill] sm:$0xff] }
 0x190   : > { %2642 = vmatmul.msk.bf16.gmra.mxu1 %vm271_vm1, %v4327_v26  ;;  %v3767_v25 = vadd.f32 %v1564_v34, %v1541_v49 }
 0x191   : > { %2650 = vmatmul.msk.bf16.gmra.mxu3 %vm271_vm1, %v3516_v36 }
 0x194   : > { %v1324_v1 = vpop.f32.mrf.mxu0  ;;  %v1569_v27 = vpop.f32.mrf.mxu3 }
 0x195   : > { %v1334_v41 = vadd.f32 %v1324_v1, %v1297_v51  ;;  %v1361_v14 = vpop.f32.mrf.mxu1  ;;  %v1529_v44 = vpop.f32.mrf.mxu2 }
 0x196   : > { %v1542_v2 = vadd.f32 %v1529_v44, %v1369_v16  ;;  %v4330_v44 = vld [vmem:[#allocation10_spill] sm:$0xff] }
 0x197   : > { %v1371_v24 = vadd.f32 %v1361_v14, %v1334_v41 }
 0x198   : > { %v3771_v61 = vadd.f32 %v1566_v63, %v1542_v2 }
 0x199   : > { %2646 = vmatmul.msk.bf16.gmra.mxu2 %vm271_vm1, %v3403_v62 }
 0x19c   : > { %v1591_v10 = vpop.f32.mrf.mxu0  ;;  %v1571_v34 = vpop.f32.mrf.mxu3 }
 0x19d   : > { %v1611_v18 = vadd.f32 %v1591_v10, %v1574_v4  ;;  %v1659_v21 = vpop.f32.mrf.mxu1  ;;  %v1532_v51 = vpop.f32.mrf.mxu2 }
 0x19e   : > { %v1543_v16 = vadd.f32 %v1532_v51, %v1370_v58 }
 0x19f   : > { %v3775_v5 = vadd.f32 %v1659_v21, %v1611_v18  ;;  %2651 = vmatmul.msk.bf16.vlgmr.msra.gmra.mxu0 %vm271_vm1, %v4328_v8  ;;  %v4336_v8 = vld [vmem:[#allocation23_spill] sm:$0xff] }
 0x1a0   : > { %2655 = vmatmul.msk.bf16.vlgmr.msra.gmra.mxu1 %vm271_vm1, %v4329_v6  ;;  %2263 = vmatpush.bf16.msra.mxu0 %v2942_v15  ;;  %v3785_v4 = vadd.f32 %v1569_v27, %v1543_v16  ;;  %v4332_v27 = vld [vmem:[#allocation13_spill] sm:$0xff] }
 0x1a1   : > { %2300 = vmatpush.bf16.msra.mxu1 %v4313_v0  ;;  %2663 = vmatmul.msk.bf16.vlgmr.msra.gmra.mxu3 %vm271_vm1, %v3231_v42  ;;  %v4331_v0 = vunpack.c.l.b16 %v4330_v44  ;;  %v4333_v2 = vunpack.c.l.b16 %v4332_v27  ;;  %v4338_v27 = vld [vmem:[#allocation28_spill] sm:$0xff] }
 0x1a2   : > { %2405 = vmatpush.bf16.msra.mxu3 %v4316_v35  ;;  %v4335_v35 = vunpack.c.l.b16 %v3301_v57  ;;  %v4348_v57 = vld [vmem:[#allocation29_spill] sm:$0xff] }
 0x1a3   : > { %v1904_v10 = vpack.c.b16 %v4333_v2, %v4331_v0  ;;  %v4337_v0 = vld [vmem:[#allocation24_spill] sm:$0xff] }
 0x1a4   : > { %v1593_v54 = vpop.f32.mrf.mxu0  ;;  %v1733_v1 = vpop.f32.mrf.mxu3  ;;  %v3828_v2 = vpack.c.b16 %v4338_v27, %v4337_v0  ;;  %v222_v0 = vld [vmem:[%s2937_s26 + $0xd0] sm:$0xf] }
 0x1a5   : > { %v1612_v26 = vadd.f32 %v1593_v54, %v1575_v28  ;;  %v1661_v49 = vpop.f32.mrf.mxu1  ;;  %v1534_v15 = vpop.f32.mrf.mxu2  ;;  %v4334_v28 = vunpack.c.l.b16 %v3253_v23 }
 0x1a6   : > { %v1544_v58 = vadd.f32 %v1534_v15, %v1371_v24 }
 0x1a7   : > { %v3790_v41 = vadd.f32 %v1661_v49, %v1612_v26  ;;  %v3804_v21 = vpack.c.b16 %v4335_v35, %v4334_v28 }
 0x1a8   : > { %v3798_v18 = vadd.f32 %v1571_v34, %v1544_v58 }
 0x1a9   : > { %2659 = vmatmul.msk.bf16.vlgmr.msra.gmra.mxu2 %vm271_vm1, %v4336_v8 }
 0x1aa   : > { %2337 = vmatpush.bf16.msra.mxu2 %v2929_v13 }
 0x1ac   : > { %v1596_v42 = vpop.f32.mrf.mxu0  ;;  %v1735_v16 = vpop.f32.mrf.mxu3 }
 0x1ad   : > { %v1613_v24 = vadd.f32 %v1596_v42, %v1576_v46  ;;  %v1664_v51 = vpop.f32.mrf.mxu1  ;;  %v1704_v34 = vpop.f32.mrf.mxu2 }
 0x1ae   : > { %v3814_v23 = vadd.f32 %v1733_v1, %v1704_v34  ;;  %v4345_v34 = vunpack.c.l.b16 %v3357_v9 }
 0x1af   : > { %v3809_v54 = vadd.f32 %v1664_v51, %v1613_v24  ;;  %2652 = vmatmul.msk.bf16.gmra.mxu0 %vm271_vm1, %v1904_v10  ;;  %v4339_v10 = vld [vmem:[#allocation14_spill] sm:$0xff]  ;;  %v4343_v24 = vld [vmem:[#allocation27_spill] sm:$0xff] }
 0x1b0   : > { %2656 = vmatmul.msk.bf16.gmra.mxu1 %vm271_vm1, %v3804_v21  ;;  %v4340_v42 = vunpack.c.l.b16 %v4339_v10  ;;  %v4344_v51 = vunpack.c.l.b16 %v4343_v24 }
 0x1b1   : > { %2664 = vmatmul.msk.bf16.gmra.mxu3 %vm271_vm1, %v3277_v52  ;;  %v4341_v52 = vld [vmem:[#allocation17_spill] sm:$0xff] }
 0x1b2   : > { %v4342_v28 = vunpack.c.l.b16 %v4341_v52 }
 0x1b4   : > { %v1598_v46 = vpop.f32.mrf.mxu0  ;;  %v1738_v49 = vpop.f32.mrf.mxu3 }
 0x1b5   : > { %v1614_v26 = vadd.f32 %v1598_v46, %v1577_v29  ;;  %v1666_v13 = vpop.f32.mrf.mxu1  ;;  %v1706_v58 = vpop.f32.mrf.mxu2  ;;  %v1905_v29 = vpack.c.b16 %v4342_v28, %v4340_v42  ;;  %v3838_v46 = vpack.c.b16 %v4345_v34, %v4344_v51  ;;  %v2012_v42 = vshrl.u32 %v222_v0, 16 }
 0x1b6   : > { %v3822_v44 = vadd.f32 %v1735_v16, %v1706_v58 }
 0x1b7   : > { %v3820_v15 = vadd.f32 %v1666_v13, %v1614_v26  ;;  %v2014_v24 = vrot.slane %v2012_v42, 4 }
 0x1b9   : > { %2660 = vmatmul.msk.bf16.gmra.mxu2 %vm271_vm1, %v3828_v2 }
 0x1bc   : > { %v1601_v35 = vpop.f32.mrf.mxu0  ;;  %v1740_v13 = vpop.f32.mrf.mxu3 }
 0x1bd   : > { %v1615_v16 = vadd.f32 %v1601_v35, %v3767_v25  ;;  %v1669_v26 = vpop.f32.mrf.mxu1  ;;  %v1709_v27 = vpop.f32.mrf.mxu2  ;;  %v2015_v25 = vshll.u32 %v222_v0, 16  ;;  %v3857_v35 = vld [vmem:[%s2937_s26 + $0x118] sm:$0xf] }
 0x1be   : > { %v3849_v9 = vadd.f32 %v1738_v49, %v1709_v27  ;;  %v1902_v49 = vunpack.c.l.b16 %v222_v0  ;;  %v1957_v10 = vunpack.c.l.b16 %v3857_v35  ;;  %v4352_v0 = vunpack.c.l.b16 %v3360_v12 }
 0x1bf   : > { %v3843_v58 = vadd.f32 %v1669_v26, %v1615_v16  ;;  %2653 = vmatmul.msk.bf16.gmra.mxu0 %vm271_vm1, %v1905_v29  ;;  %v2017_v51 = vrot.slane %v2015_v25, 5  ;;  %v223_v26 = vld [vmem:[%s2937_s26 + $0xd4] sm:$0x1]  ;;  %v4350_v25 = vld [vmem:[#allocation18_spill] sm:$0xff] }
 0x1c0   : > { %2657 = vmatmul.msk.bf16.gmra.mxu1 %vm271_vm1, %v3838_v46  ;;  %v2021_v42 = vshll.u32 %v223_v26, 16  ;;  %v4351_v63 = vunpack.c.l.b16 %v4350_v25 }
 0x1c1   : > { %4346 = vst [vmem:[#allocation21_spill] sm:$0xff] %v3843_v58  ;;  %2665 = vmatmul.msk.bf16.gmra.mxu3 %vm271_vm1, %v3334_v33  ;;  %v2018_v14 = vor.u32 %v2017_v51, %v2014_v24  ;;  %v3875_v58 = vpack.c.b16 %v1957_v10, %v4352_v0 }
 0x1c3   : > { %v2019_v33 = vrot.slane %v2018_v14, 4 }
 0x1c4   : > { %v1603_v52 = vpop.f32.mrf.mxu0  ;;  %v1743_v34 = vpop.f32.mrf.mxu3 }
 0x1c5   : > { %v1616_v28 = vadd.f32 %v1603_v52, %v3771_v61  ;;  %v1671_v29 = vpop.f32.mrf.mxu1  ;;  %v1711_v27 = vpop.f32.mrf.mxu2  ;;  %v4349_v61 = vld [vmem:[#allocation31_spill] sm:$0xff] }
 0x1c6   : > { %v3863_v1 = vadd.f32 %v1740_v13, %v1711_v27  ;;  %v3869_v52 = vpack.c.b16 %v4349_v61, %v4348_v57 }
 0x1c7   : > { %v3859_v16 = vadd.f32 %v1671_v29, %v1616_v28  ;;  %v1906_v28 = vpack.c.b16 %v1902_v49, %v4351_v63 }
 0x1c9   : > { %4347 = vst [vmem:[#allocation36_spill] sm:$0xff] %v3859_v16  ;;  %2661 = vmatmul.msk.bf16.gmra.mxu2 %vm271_vm1, %v3869_v52  ;;  %v2023_v16 = vrot.slane %v2021_v42, 5 }
 0x1cb   : > { %v2024_v10 = vsel %vm2990_vm4, %v2019_v33, %v2023_v16 }
 0x1cc   : > { %v1606_v29 = vpop.f32.mrf.mxu0  ;;  %v1745_v57 = vpop.f32.mrf.mxu3  ;;  %v2025_v49 = vunpack.c.l.b16 %v2024_v10 }
 0x1cd   : > { %v1617_v13 = vadd.f32 %v1606_v29, %v3785_v4  ;;  %v1674_v27 = vpop.f32.mrf.mxu1  ;;  %v1714_v24 = vpop.f32.mrf.mxu2  ;;  %v4353_v29 = vld [vmem:[#allocation32_spill] sm:$0xff] }
 0x1ce   : > { %v1744_v12 = vadd.f32 %v1743_v34, %v1714_v24  ;;  %v3897_v0 = vpack.c.b16 %v2025_v49, %v4353_v29 }
 0x1cf   : > { %v3880_v61 = vadd.f32 %v1674_v27, %v1617_v13  ;;  %2654 = vmatmul.msk.bf16.gmra.mxu0 %vm271_vm1, %v1906_v28 }
 0x1d0   : > { %2658 = vmatmul.msk.bf16.gmra.mxu1 %vm271_vm1, %v3875_v58 }
 0x1d1   : > { %v1693_v63 = vmax.f32 %v3722_v30, %v3880_v61  ;;  %2666 = vmatmul.msk.bf16.gmra.mxu3 %vm271_vm1, %v3391_v20 }
 0x1d4   : > { %v1608_v4 = vpop.f32.mrf.mxu0  ;;  %v1748_v26 = vpop.f32.mrf.mxu3 }
 0x1d5   : > { %v1618_v14 = vadd.f32 %v1608_v4, %v3798_v18  ;;  %v1676_v51 = vpop.f32.mrf.mxu1  ;;  %v1716_v25 = vpop.f32.mrf.mxu2 }
 0x1d6   : > { %v1746_v28 = vadd.f32 %v1745_v57, %v1716_v25  ;;  %v4354_v57 = vld [vmem:[#allocation38_spill] sm:$0xff] }
 0x1d7   : > { %v3892_v42 = vadd.f32 %v1676_v51, %v1618_v14 }
 0x1d9   : > { %v1694_v34 = vmax.f32 %v3731_v47, %v3892_v42  ;;  %2662 = vmatmul.msk.bf16.gmra.mxu2 %vm271_vm1, %v3897_v0 }
 0x1dc   : > { %v1762_v16 = vpop.f32.mrf.mxu0  ;;  %v1750_v33 = vpop.f32.mrf.mxu3 }
 0x1dd   : > { %v1782_v20 = vadd.f32 %v1762_v16, %v3814_v23  ;;  %v1799_v18 = vpop.f32.mrf.mxu1  ;;  %v1719_v27 = vpop.f32.mrf.mxu2 }
 0x1de   : > { %v1749_v24 = vadd.f32 %v1748_v26, %v1719_v27 }
 0x1df   : > { %v1819_v13 = vadd.f32 %v1799_v18, %v1782_v20  ;;  %2667 = vmatmul.msk.bf16.vlgmr.msrb.gmra.mxu0 %vm271_vm1, %v3227_v32  ;;  %v4355_v18 = vld [vmem:[#allocation6_spill] sm:$0xff] }
 0x1e0   : > { %2671 = vmatmul.msk.bf16.vlgmr.msrb.gmra.mxu1 %vm271_vm1, %v4354_v57 }
 0x1e1   : > { %2679 = vmatmul.msk.bf16.vlgmr.msrb.gmra.mxu3 %vm271_vm1, %v3067_v55 }
 0x1e4   : > { %v1764_v10 = vpop.f32.mrf.mxu0  ;;  %v1873_v51 = vpop.f32.mrf.mxu3 }
 0x1e5   : > { %v1783_v4 = vadd.f32 %v1764_v10, %v3822_v44  ;;  %v1801_v14 = vpop.f32.mrf.mxu1  ;;  %v1721_v49 = vpop.f32.mrf.mxu2 }
 0x1e6   : > { %v1751_v25 = vadd.f32 %v1750_v33, %v1721_v49 }
 0x1e7   : > { %v1820_v23 = vadd.f32 %v1801_v14, %v1783_v4 }
 0x1e9   : > { %2675 = vmatmul.msk.bf16.vlgmr.msrb.gmra.mxu2 %vm271_vm1, %v3245_v53 }
 0x1ec   : > { %v1767_v29 = vpop.f32.mrf.mxu0  ;;  %v1875_v20 = vpop.f32.mrf.mxu3 }
 0x1ed   : > { %v1784_v32 = vadd.f32 %v1767_v29, %v3849_v9  ;;  %v1804_v16 = vpop.f32.mrf.mxu1  ;;  %v1836_v55 = vpop.f32.mrf.mxu2 }
 0x1ee   : > { %v1856_v44 = vadd.f32 %v1836_v55, %v1819_v13 }
 0x1ef   : > { %v1821_v26 = vadd.f32 %v1804_v16, %v1784_v32  ;;  %2668 = vmatmul.msk.bf16.gmra.mxu0 %vm271_vm1, %v3274_v48 }
 0x1f0   : > { %2672 = vmatmul.msk.bf16.gmra.mxu1 %vm271_vm1, %v4355_v18  ;;  %v1893_v27 = vadd.f32 %v1873_v51, %v1856_v44 }
 0x1f1   : > { %2680 = vmatmul.msk.bf16.gmra.mxu3 %vm271_vm1, %v4317_v59 }
 0x1f4   : > { %v1769_v33 = vpop.f32.mrf.mxu0  ;;  %v1878_v9 = vpop.f32.mrf.mxu3 }
 0x1f5   : > { %v1785_v53 = vadd.f32 %v1769_v33, %v3863_v1  ;;  %v1806_v57 = vpop.f32.mrf.mxu1  ;;  %v1838_v4 = vpop.f32.mrf.mxu2 }
 0x1f6   : > { %v1857_v14 = vadd.f32 %v1838_v4, %v1820_v23 }
 0x1f7   : > { %v1822_v10 = vadd.f32 %v1806_v57, %v1785_v53 }
 0x1f8   : > { %v1894_v49 = vadd.f32 %v1875_v20, %v1857_v14 }
 0x1f9   : > { %2676 = vmatmul.msk.bf16.gmra.mxu2 %vm271_vm1, %v4306_v50 }
 0x1fc   : > { %v1772_v29 = vpop.f32.mrf.mxu0  ;;  %v1880_v13 = vpop.f32.mrf.mxu3 }
 0x1fd   : > { %v1786_v48 = vadd.f32 %v1772_v29, %v1744_v12  ;;  %v1809_v32 = vpop.f32.mrf.mxu1  ;;  %v1841_v59 = vpop.f32.mrf.mxu2 }
 0x1fe   : > { %v1858_v1 = vadd.f32 %v1841_v59, %v1821_v26 }
 0x1ff   : > { %v1823_v51 = vadd.f32 %v1809_v32, %v1786_v48  ;;  %2669 = vmatmul.msk.bf16.gmra.mxu0 %vm271_vm1, %v3330_v17 }
 0x200   : > { %2673 = vmatmul.msk.bf16.gmra.mxu1 %vm271_vm1, %v3626_v3  ;;  %v1895_v16 = vadd.f32 %v1878_v9, %v1858_v1 }
 0x201   : > { %2681 = vmatmul.msk.bf16.gmra.mxu3 %vm271_vm1, %v3478_v22 }
 0x204   : > { %v1774_v23 = vpop.f32.mrf.mxu0  ;;  %v1883_v50 = vpop.f32.mrf.mxu3 }
 0x205   : > { %v1787_v20 = vadd.f32 %v1774_v23, %v1746_v28  ;;  %v1811_v55 = vpop.f32.mrf.mxu1  ;;  %v1843_v18 = vpop.f32.mrf.mxu2  ;;  %v4356_v23 = vld [vmem:[#allocation15_spill] sm:$0xff] }
 0x206   : > { %v1859_v44 = vadd.f32 %v1843_v18, %v1822_v10 }
 0x207   : > { %v1824_v12 = vadd.f32 %v1811_v55, %v1787_v20  ;;  %v4357_v20 = vld [vmem:[#allocation37_spill] sm:$0xff] }
 0x208   : > { %v1896_v33 = vadd.f32 %v1880_v13, %v1859_v44  ;;  %v4358_v55 = vpack.c.b16 %v4356_v23, %v4357_v20  ;;  %v241_v20 = vld [vmem:[%s2937_s26 + $0x11c] sm:$0x1]  ;;  %s2768_s26 = scalar_lea.hbm %s4173_s3, 128 }
 0x209   : > { %2677 = vmatmul.msk.bf16.gmra.mxu2 %vm271_vm1, %v3348_v7  ;;  %p2770_p1 = scmp.lt.s32.totalorder %s2768_s26, %s2764_s20 }
 0x20b   : > { %p2771_p2 = por %p2770_p1, %p2769_p0 }
 0x20c   : > { %v1777_v53 = vpop.f32.mrf.mxu0  ;;  %v1885_v3 = vpop.f32.mrf.mxu3 }
 0x20d   : > { %v1788_v17 = vadd.f32 %v1777_v53, %v1749_v24  ;;  %v1814_v57 = vpop.f32.mrf.mxu1  ;;  %v1846_v22 = vpop.f32.mrf.mxu2  ;;  %p2772_p3 = pnand %p2771_p2, %p2767_p13 }
 0x20e   : > { %v1860_v28 = vadd.f32 %v1846_v22, %v1823_v51  ;;  %v4359_v22 = vld [vmem:[#allocation7_spill] sm:$0xff] }
 0x20f   : > { %v1825_v26 = vadd.f32 %v1814_v57, %v1788_v17  ;;  %2670 = vmatmul.msk.bf16.gmra.mxu0 %vm271_vm1, %v3387_v43 }
 0x210   : > { %2674 = vmatmul.msk.bf16.gmra.mxu1 %vm271_vm1, %v3650_v39  ;;  %v1897_v9 = vadd.f32 %v1883_v50, %v1860_v28  ;;  %v4360_v28 = vld [vmem:[#allocation19_spill] sm:$0xff] }
 0x211   : > { %2682 = vmatmul.msk.bf16.gmra.mxu3 %vm271_vm1, %v3516_v36 }
 0x214   : > { %v1779_v10 = vpop.f32.mrf.mxu0  ;;  %v1888_v7 = vpop.f32.mrf.mxu3 }
 0x215   : > { %v1789_v4 = vadd.f32 %v1779_v10, %v1751_v25  ;;  %v1816_v14 = vpop.f32.mrf.mxu1  ;;  %v1848_v29 = vpop.f32.mrf.mxu2  ;;  %v4361_v10 = vld [vmem:[#allocation8_spill] sm:$0xff] }
 0x216   : > { %v1861_v48 = vadd.f32 %v1848_v29, %v1824_v12 }
 0x217   : > { %v1826_v24 = vadd.f32 %v1816_v14, %v1789_v4  ;;  %v2383_v4 = vpack.c.b16 %v4361_v10, %v4360_v28 }
 0x218   : > { %v3935_v32 = vadd.f32 %v1885_v3, %v1861_v48 }
 0x219   : > { %2678 = vmatmul.msk.bf16.gmra.mxu2 %vm271_vm1, %v3403_v62 }
 0x21c   : > { %v1928_v13 = vpop.f32.mrf.mxu0  ;;  %v1890_v51 = vpop.f32.mrf.mxu3 }
 0x21d   : > { %v1948_v43 = vadd.f32 %v1928_v13, %v1893_v27  ;;  %v1983_v39 = vpop.f32.mrf.mxu1  ;;  %v1851_v36 = vpop.f32.mrf.mxu2 }
 0x21e   : > { %v1862_v25 = vadd.f32 %v1851_v36, %v1825_v26 }
 0x21f   : > { %v2003_v59 = vadd.f32 %v1983_v39, %v1948_v43  ;;  %2683 = vmatmul.msk.bf16.vlgmr.msra.gmra.mxu0 %vm271_vm1, %v3413_v31  ;;  %v2371_v39 = vshll.u32 %v3857_v35, 16 }
 0x220   : > { %2687 = vmatmul.msk.bf16.vlgmr.msra.gmra.mxu1 %vm271_vm1, %v4329_v6  ;;  %v3943_v1 = vadd.f32 %v1888_v7, %v1862_v25  ;;  %v4362_v7 = vmax.f32 %v3657_v60, %v3775_v5  ;;  %v4363_v60 = vmax.f32 %v3670_v37, %v3790_v41  ;;  %v4365_v37 = vld [vmem:[#allocation26_spill] sm:$0xff]  ;;  %v4366_v41 = vld [vmem:[#allocation39_spill] sm:$0xff] }
 0x221   : > { %2695 = vmatmul.msk.bf16.vlgmr.msra.gmra.mxu3 %vm271_vm1, %v4358_v55  ;;  %v2373_v25 = vrot.slane %v2371_v39, 5 }
 0x224   : > { %v1930_v62 = vpop.f32.mrf.mxu0  ;;  %v3949_v12 = vpop.f32.mrf.mxu3 }
 0x225   : > { %v1949_v27 = vadd.f32 %v1930_v62, %v1894_v49  ;;  %v1985_v50 = vpop.f32.mrf.mxu1  ;;  %v1853_v44 = vpop.f32.mrf.mxu2 }
 0x226   : > { %v1863_v31 = vadd.f32 %v1853_v44, %v1826_v24 }
 0x227   : > { %v2004_v18 = vadd.f32 %v1985_v50, %v1949_v27  ;;  %v4364_v27 = vld [vmem:[#allocation9_spill] sm:$0xff]  ;;  %v2384_v50 = vpack.c.b16 %v4366_v41, %v4365_v37 }
 0x228   : > { %v3951_v53 = vadd.f32 %v1890_v51, %v1863_v31  ;;  %v2377_v31 = vshll.u32 %v241_v20, 16 }
 0x229   : > { %2691 = vmatmul.msk.bf16.vlgmr.msra.gmra.mxu2 %vm271_vm1, %v4336_v8 }
 0x22c   : > { %v1933_v17 = vpop.f32.mrf.mxu0  ;;  %v3955_v3 = vpop.f32.mrf.mxu3 }
 0x22d   : > { %v1950_v6 = vadd.f32 %v1933_v17, %v1895_v16  ;;  %v1988_v57 = vpop.f32.mrf.mxu1  ;;  %v2051_v49 = vpop.f32.mrf.mxu2 }
 0x22e   : > { %v2071_v14 = vadd.f32 %v2051_v49, %v2003_v59  ;;  %v2379_v49 = vrot.slane %v2377_v31, 5 }
 0x22f   : > { %v2005_v26 = vadd.f32 %v1988_v57, %v1950_v6  ;;  %2684 = vmatmul.msk.bf16.gmra.mxu0 %vm271_vm1, %v4359_v22 }
 0x230   : > { %2688 = vmatmul.msk.bf16.gmra.mxu1 %vm271_vm1, %v3804_v21  ;;  %v3966_v8 = vmax.f32 %v4362_v7, %v2071_v14  ;;  %v2368_v21 = vshrl.u32 %v3857_v35, 16 }
 0x231   : > { %2696 = vmatmul.msk.bf16.gmra.mxu3 %vm271_vm1, %v2383_v4 }
 0x232   : > { %v2370_v36 = vrot.slane %v2368_v21, 4 }
 0x234   : > { %v1935_v16 = vpop.f32.mrf.mxu0  ;;  %v3969_v48 = vpop.f32.mrf.mxu3  ;;  %v2374_v44 = vor.u32 %v2373_v25, %v2370_v36 }
 0x235   : > { %v1951_v24 = vadd.f32 %v1935_v16, %v1896_v33  ;;  %v1990_v29 = vpop.f32.mrf.mxu1  ;;  %v2053_v43 = vpop.f32.mrf.mxu2 }
 0x236   : > { %v2072_v51 = vadd.f32 %v2053_v43, %v2004_v18  ;;  %v2375_v22 = vrot.slane %v2374_v44, 4  ;;  %v4370_v43 = vld [vmem:[#allocation21_spill] sm:$0xff] }
 0x237   : > { %v2006_v13 = vadd.f32 %v1990_v29, %v1951_v24  ;;  %v4371_v21 = vmax.f32 %v3703_v19, %v4370_v43 }
 0x238   : > { %v3976_v5 = vmax.f32 %v4363_v60, %v2072_v51  ;;  %v2380_v4 = vsel %vm2990_vm4, %v2375_v22, %v2379_v49 }
 0x239   : > { %2692 = vmatmul.msk.bf16.gmra.mxu2 %vm271_vm1, %v3828_v2  ;;  %v4367_v2 = vmax.f32 %v3682_v56, %v3809_v54  ;;  %v4368_v56 = vmax.f32 %v3694_v38, %v3820_v15  ;;  %v2381_v7 = vunpack.c.l.b16 %v2380_v4  ;;  %v4369_v38 = vld [vmem:[#allocation40_spill] sm:$0xff] }
 0x23b   : > { %v2385_v15 = vpack.c.b16 %v2381_v7, %v4369_v38 }
 0x23c   : > { %v1938_v59 = vpop.f32.mrf.mxu0  ;;  %v3981_v55 = vpop.f32.mrf.mxu3 }
 0x23d   : > { %v1952_v33 = vadd.f32 %v1938_v59, %v1897_v9  ;;  %v1993_v23 = vpop.f32.mrf.mxu1  ;;  %v2056_v35 = vpop.f32.mrf.mxu2 }
 0x23e   : > { %v2073_v18 = vadd.f32 %v2056_v35, %v2005_v26 }
 0x23f   : > { %v2007_v62 = vadd.f32 %v1993_v23, %v1952_v33  ;;  %2685 = vmatmul.msk.bf16.gmra.mxu0 %vm271_vm1, %v4364_v27 }
 0x240   : > { %2689 = vmatmul.msk.bf16.gmra.mxu1 %vm271_vm1, %v3838_v46  ;;  %v3992_v9 = vmax.f32 %v4367_v2, %v2073_v18 }
 0x241   : > { %2697 = vmatmul.msk.bf16.gmra.mxu3 %vm271_vm1, %v2384_v50 }
 0x244   : > { %v1940_v17 = vpop.f32.mrf.mxu0  ;;  %v3996_v46 = vpop.f32.mrf.mxu3 }
 0x245   : > { %v1953_v6 = vadd.f32 %v1940_v17, %v3935_v32  ;;  %v1995_v57 = vpop.f32.mrf.mxu1  ;;  %v2058_v10 = vpop.f32.mrf.mxu2 }
 0x246   : > { %v2074_v26 = vadd.f32 %v2058_v10, %v2006_v13 }
 0x247   : > { %v2008_v28 = vadd.f32 %v1995_v57, %v1953_v6 }
 0x248   : > { %v4003_v54 = vmax.f32 %v4368_v56, %v2074_v26 }
 0x249   : > { %2693 = vmatmul.msk.bf16.gmra.mxu2 %vm271_vm1, %v3869_v52 }
 0x24c   : > { %v1943_v14 = vpop.f32.mrf.mxu0  ;;  %v4008_v24 = vpop.f32.mrf.mxu3 }
 0x24d   : > { %v1954_v32 = vadd.f32 %v1943_v14, %v3943_v1  ;;  %v1998_v16 = vpop.f32.mrf.mxu1  ;;  %v2061_v45 = vpop.f32.mrf.mxu2 }
 0x24e   : > { %v2075_v13 = vadd.f32 %v2061_v45, %v2007_v62 }
 0x24f   : > { %v2009_v29 = vadd.f32 %v1998_v16, %v1954_v32  ;;  %2686 = vmatmul.msk.bf16.gmra.mxu0 %vm271_vm1, %v3717_v11 }
 0x250   : > { %2690 = vmatmul.msk.bf16.gmra.mxu1 %vm271_vm1, %v3875_v58  ;;  %v4018_v52 = vmax.f32 %v4371_v21, %v2075_v13  ;;  %v4372_v58 = vld [vmem:[#allocation36_spill] sm:$0xff] }
 0x251   : > { %2698 = vmatmul.msk.bf16.gmra.mxu3 %vm271_vm1, %v2385_v15  ;;  %v4373_v25 = vmax.f32 %v3712_v40, %v4372_v58 }
 0x254   : > { %v1945_v1 = vpop.f32.mrf.mxu0  ;;  %v4022_v60 = vpop.f32.mrf.mxu3 }
 0x255   : > { %v1955_v39 = vadd.f32 %v1945_v1, %v3951_v53  ;;  %v2000_v51 = vpop.f32.mrf.mxu1  ;;  %v2063_v59 = vpop.f32.mrf.mxu2 }
 0x256   : > { %v2076_v36 = vadd.f32 %v2063_v59, %v2008_v28 }
 0x257   : > { %v2010_v11 = vadd.f32 %v2000_v51, %v1955_v39 }
 0x258   : > { %v4027_v33 = vmax.f32 %v4373_v25, %v2076_v36 }
 0x259   : > { %2694 = vmatmul.msk.bf16.gmra.mxu2 %vm271_vm1, %v3897_v0 }
 0x25c   : > { %v2125_v23 = vpop.f32.mrf.mxu0  ;;  %v4031_v20 = vpop.f32.mrf.mxu3 }
 0x25d   : > { %v2154_v19 = vpop.f32.mrf.mxu1  ;;  %v2066_v62 = vpop.f32.mrf.mxu2  ;;  %v2126_v38 = vadd.f32 %v2125_v23, %v3949_v12 }
 0x25e   : > { %v2077_v53 = vadd.f32 %v2066_v62, %v2009_v29 }
 0x25f   : > { %v2174_v43 = vadd.f32 %v2154_v19, %v2126_v38 }
 0x260   : > { %v4036_v27 = vmax.f32 %v1693_v63, %v2077_v53 }
 0x264   : > { %v2127_v35 = vpop.f32.mrf.mxu0  ;;  %v2228_v41 = vpop.f32.mrf.mxu3 }
 0x265   : > { %v2156_v37 = vpop.f32.mrf.mxu1  ;;  %v2068_v40 = vpop.f32.mrf.mxu2  ;;  %v2128_v39 = vadd.f32 %v2127_v35, %v3955_v3 }
 0x266   : > { %v2078_v50 = vadd.f32 %v2068_v40, %v2010_v11 }
 0x267   : > { %v2175_v58 = vadd.f32 %v2156_v37, %v2128_v39  ;;  %v4084_v37 = vld [vmem:[%s4172_s2] ss:$0 sm:$0xff] }
 0x268   : > { %v4041_v18 = vmax.f32 %v1694_v34, %v2078_v50 }
 0x26c   : > { %v2130_v0 = vpop.f32.mrf.mxu0  ;;  %v2230_v31 = vpop.f32.mrf.mxu3 }
 0x26d   : > { %v2159_v44 = vpop.f32.mrf.mxu1  ;;  %v2191_v2 = vpop.f32.mrf.mxu2  ;;  %v2131_v23 = vadd.f32 %v2130_v0, %v3969_v48 }
 0x26e   : > { %v2211_v1 = vadd.f32 %v2191_v2, %v2174_v43 }
 0x26f   : > { %v2176_v3 = vadd.f32 %v2159_v44, %v2131_v23 }
 0x270   : > { %v2248_v36 = vadd.f32 %v2228_v41, %v2211_v1 }
 0x274   : > { %v2132_v17 = vpop.f32.mrf.mxu0  ;;  %v2233_v57 = vpop.f32.mrf.mxu3 }
 0x275   : > { %v2161_v6 = vpop.f32.mrf.mxu1  ;;  %v2193_v30 = vpop.f32.mrf.mxu2  ;;  %v2133_v0 = vadd.f32 %v2132_v17, %v3981_v55 }
 0x276   : > { %v2212_v62 = vadd.f32 %v2193_v30, %v2175_v58 }
 0x278   : > { %v2249_v50 = vadd.f32 %v2230_v31, %v2212_v62 }
 0x27c   : > { %v4043_v61 = vpop.f32.mrf.mxu0  ;;  %v4047_v22 = vpop.f32.mrf.mxu3 }
 0x27d   : > { %v4045_v63 = vpop.f32.mrf.mxu1  ;;  %v2196_v49 = vpop.f32.mrf.mxu2  ;;  %v2136_v17 = vadd.f32 %v4043_v61, %v3996_v46 }
 0x27e   : > { %v2213_v41 = vadd.f32 %v2196_v49, %v2176_v3 }
 0x280   : > { %v2250_v1 = vadd.f32 %v2233_v57, %v2213_v41 }
 0x284   : > { %v4049_v28 = vpop.f32.mrf.mxu0  ;;  %v4053_v42 = vpop.f32.mrf.mxu3 }
 0x285   : > { %v4051_v47 = vpop.f32.mrf.mxu1  ;;  %v2198_v34 = vpop.f32.mrf.mxu2 }
 0x28c   : > { %v4055_v10 = vpop.f32.mrf.mxu0  ;;  %v4059_v4 = vpop.f32.mrf.mxu3 }
 0x28d   : > { %v4057_v26 = vpop.f32.mrf.mxu1  ;;  %v4061_v56 = vpop.f32.mrf.mxu2 }
 0x294   : > { %v4063_v14 = vpop.f32.mrf.mxu0  ;;  %v4067_v32 = vpop.f32.mrf.mxu3 }
 0x295   : > { %v4065_v7 = vpop.f32.mrf.mxu1  ;;  %v4069_v16 = vpop.f32.mrf.mxu2 }
 0x29c   : > { %v2265_v29 = vpop.f32.mrf.mxu0  ;;  %v4072_v15 = vpop.f32.mrf.mxu3 }
 0x29d   : > { %v2302_v45 = vpop.f32.mrf.mxu1  ;;  %v4074_v13 = vpop.f32.mrf.mxu2  ;;  %v2285_v25 = vadd.f32 %v2265_v29, %v2248_v36 }
 0x29f   : > { %v2322_v53 = vadd.f32 %v2302_v45, %v2285_v25 }
 0x2a4   : > { %v2267_v21 = vpop.f32.mrf.mxu0  ;;  %v2407_v51 = vpop.f32.mrf.mxu3 }
 0x2a5   : > { %v4077_v11 = vpop.f32.mrf.mxu2  ;;  %v2304_v59 = vpop.f32.mrf.mxu1  ;;  %v2286_v35 = vadd.f32 %v2267_v21, %v2249_v50  ;;  %v2138_v50 = vadd.f32 %v4049_v28, %v4008_v24  ;;  %v2141_v28 = vadd.f32 %v4055_v10, %v4022_v60 }
 0x2a7   : > { %v2323_v30 = vadd.f32 %v2304_v59, %v2286_v35 }
 0x2ac   : > { %v2270_v12 = vpop.f32.mrf.mxu0  ;;  %v2409_v40 = vpop.f32.mrf.mxu3 }
 0x2ad   : > { %v2339_v19 = vpop.f32.mrf.mxu2  ;;  %v2307_v38 = vpop.f32.mrf.mxu1  ;;  %v2287_v49 = vadd.f32 %v2270_v12, %v2250_v1  ;;  %v2178_v12 = vadd.f32 %v4045_v63, %v2136_v17  ;;  %v2179_v63 = vadd.f32 %v4051_v47, %v2138_v50 }
 0x2ae   : > { %v2359_v2 = vadd.f32 %v2339_v19, %v2322_v53 }
 0x2af   : > { %v2324_v59 = vadd.f32 %v2307_v38, %v2287_v49 }
 0x2b0   : > { %v2427_v43 = vadd.f32 %v2407_v51, %v2359_v2  ;;  %v2177_v51 = vadd.f32 %v2161_v6, %v2133_v0  ;;  %v2216_v0 = vadd.f32 %v4069_v16, %v2179_v63 }
 0x2b2   : > { %v2435_v48 = vmax.f32 %v3966_v8, %v2427_v43  ;;  %v2214_v58 = vadd.f32 %v2198_v34, %v2177_v51  ;;  %v2253_v47 = vadd.f32 %v4059_v4, %v2216_v0  ;;  %v2143_v51 = vadd.f32 %v4063_v14, %v4031_v20 }
 0x2b4   : > { %v2447_v31 = vadd.f32 %v4084_v37, %v2435_v48  ;;  %v2272_v29 = vpop.f32.mrf.mxu0  ;;  %v2412_v44 = vpop.f32.mrf.mxu3  ;;  %v2251_v6 = vadd.f32 %v4047_v22, %v2214_v58  ;;  %v2181_v17 = vadd.f32 %v4065_v7, %v2143_v51 }
 0x2b5   : > { %v2341_v45 = vpop.f32.mrf.mxu2  ;;  %v2309_v8 = vpop.f32.mrf.mxu1 }
 0x2b6   : > { %v2455_v21 = vmax.f32 %v2447_v31, 0.0  ;;  %v2360_v39 = vadd.f32 %v2341_v45, %v2323_v30  ;;  %v2288_v34 = vadd.f32 %v2272_v29, %v2251_v6 }
 0x2b8   : > { %2463 = vst [vmem:[%s4091_s6] sm:$0xff] %v2455_v21  ;;  %v2428_v36 = vadd.f32 %v2409_v40, %v2360_v39  ;;  %v2325_v2 = vadd.f32 %v2309_v8, %v2288_v34  ;;  %v2180_v21 = vadd.f32 %v4057_v26, %v2141_v28 }
 0x2ba   : > { %v2436_v55 = vmax.f32 %v3976_v5, %v2428_v36  ;;  %v2215_v5 = vadd.f32 %v4061_v56, %v2178_v12 }
 0x2bc   : > { %v2448_v25 = vadd.f32 %v4084_v37, %v2436_v55  ;;  %v2275_v53 = vpop.f32.mrf.mxu0  ;;  %v2414_v19 = vpop.f32.mrf.mxu3  ;;  %v2252_v35 = vadd.f32 %v4053_v42, %v2215_v5 }
 0x2bd   : > { %v2344_v57 = vpop.f32.mrf.mxu2  ;;  %v2312_v61 = vpop.f32.mrf.mxu1 }
 0x2be   : > { %v2456_v62 = vmax.f32 %v2448_v25, 0.0  ;;  %v2361_v23 = vadd.f32 %v2344_v57, %v2324_v59  ;;  %v2289_v41 = vadd.f32 %v2275_v53, %v2252_v35  ;;  %v2218_v59 = vadd.f32 %v4077_v11, %v2181_v17 }
 0x2c0   : > { %2464 = vst [vmem:[%s4091_s6 + $0x8] sm:$0xff] %v2456_v62  ;;  %v2429_v40 = vadd.f32 %v2412_v44, %v2361_v23  ;;  %v2326_v30 = vadd.f32 %v2312_v61, %v2289_v41  ;;  %v2255_v23 = vadd.f32 %v4072_v15, %v2218_v59 }
 0x2c2   : > { %v2437_v46 = vmax.f32 %v3992_v9, %v2429_v40 }
 0x2c4   : > { %v2449_v22 = vadd.f32 %v4084_v37, %v2437_v46  ;;  %v2277_v48 = vpop.f32.mrf.mxu0  ;;  %v2417_v9 = vpop.f32.mrf.mxu3 }
 0x2c5   : > { %v2346_v38 = vpop.f32.mrf.mxu2  ;;  %v2314_v42 = vpop.f32.mrf.mxu1  ;;  %v2290_v1 = vadd.f32 %v2277_v48, %v2253_v47 }
 0x2c6   : > { %v2457_v3 = vmax.f32 %v2449_v22, 0.0  ;;  %v2362_v43 = vadd.f32 %v2346_v38, %v2325_v2 }
 0x2c7   : > { %v2327_v49 = vadd.f32 %v2314_v42, %v2290_v1 }
 0x2c8   : > { %2465 = vst [vmem:[%s4091_s6 + $0x10] sm:$0xff] %v2457_v3  ;;  %v2430_v56 = vadd.f32 %v2414_v19, %v2362_v43 }
 0x2ca   : > { %v2438_v24 = vmax.f32 %v4003_v54, %v2430_v56  ;;  %v2217_v54 = vadd.f32 %v4074_v13, %v2180_v21 }
 0x2cc   : > { %v2450_v31 = vadd.f32 %v4084_v37, %v2438_v24  ;;  %v2280_v60 = vpop.f32.mrf.mxu0  ;;  %v2419_v10 = vpop.f32.mrf.mxu3  ;;  %v2254_v26 = vadd.f32 %v4067_v32, %v2217_v54 }
 0x2cd   : > { %v2349_v29 = vpop.f32.mrf.mxu2  ;;  %v2317_v55 = vpop.f32.mrf.mxu1 }
 0x2ce   : > { %v2458_v45 = vmax.f32 %v2450_v31, 0.0  ;;  %v2363_v44 = vadd.f32 %v2349_v29, %v2326_v30  ;;  %v2291_v13 = vadd.f32 %v2280_v60, %v2254_v26 }
 0x2d0   : > { %2466 = vst [vmem:[%s4091_s6 + $0x18] sm:$0xff] %v2458_v45  ;;  %v2431_v16 = vadd.f32 %v2417_v9, %v2363_v44  ;;  %v2328_v20 = vadd.f32 %v2317_v55, %v2291_v13 }
 0x2d2   : > { %v2439_v39 = vmax.f32 %v4018_v52, %v2431_v16 }
 0x2d4   : > { %v2451_v36 = vadd.f32 %v4084_v37, %v2439_v39  ;;  %v2282_v57 = vpop.f32.mrf.mxu0  ;;  %v2422_v62 = vpop.f32.mrf.mxu3 }
 0x2d5   : > { %v2351_v4 = vpop.f32.mrf.mxu2  ;;  %v2292_v7 = vadd.f32 %v2282_v57, %v2255_v23  ;;  %v2319_v12 = vpop.f32.mrf.mxu1 }
 0x2d6   : > { %v2459_v8 = vmax.f32 %v2451_v36, 0.0  ;;  %v2364_v58 = vadd.f32 %v2351_v4, %v2327_v49 }
 0x2d8   : > { %2467 = vst [vmem:[%s4091_s6 + $0x20] sm:$0xff] %v2459_v8  ;;  %v2432_v52 = vadd.f32 %v2419_v10, %v2364_v58 }
 0x2da   : > { %v2440_v25 = vmax.f32 %v4027_v33, %v2432_v52  ;;  %v2329_v33 = vadd.f32 %v2319_v12, %v2292_v7 }
 0x2dc   : > { %v2452_v14 = vadd.f32 %v4084_v37, %v2440_v25  ;;  %v2424_v61 = vpop.f32.mrf.mxu3 }
 0x2dd   : > { %v2354_v6 = vpop.f32.mrf.mxu2 }
 0x2de   : > { %v2460_v32 = vmax.f32 %v2452_v14, 0.0  ;;  %v2365_v53 = vadd.f32 %v2354_v6, %v2328_v20 }
 0x2e0   : > { %2468 = vst [vmem:[%s4091_s6 + $0x28] sm:$0xff] %v2460_v32  ;;  %v2433_v19 = vadd.f32 %v2422_v62, %v2365_v53 }
 0x2e2   : > { %v2441_v11 = vmax.f32 %v4036_v27, %v2433_v19 }
 0x2e4   : > { %v2453_v34 = vadd.f32 %v4084_v37, %v2441_v11 }
 0x2e5   : > { %v2356_v40 = vpop.f32.mrf.mxu2 }
 0x2e6   : > { %v2461_v5 = vmax.f32 %v2453_v34, 0.0  ;;  %v2366_v46 = vadd.f32 %v2356_v40, %v2329_v33 }
 0x2e8   : > { %2469 = vst [vmem:[%s4091_s6 + $0x30] sm:$0xff] %v2461_v5  ;;  %v2434_v15 = vadd.f32 %v2424_v61, %v2366_v46 }
 0x2ea   : > { %v2442_v50 = vmax.f32 %v4041_v18, %v2434_v15 }
 0x2ec   : > { %v2454_v27 = vadd.f32 %v4084_v37, %v2442_v50 }
 0x2ee   : > { %v2462_v2 = vmax.f32 %v2454_v27, 0.0 }
 0x2f0   : > { %2470 = vst [vmem:[%s4091_s6 + $0x38] sm:$0xff] %v2462_v2 }
 0x2f1   : > { %2775 = shalt.err (!%p2772_p3)
}
 0x2f2   : > { %s2812_s29 = smov 128   ;;  %s2813_s30 = smov 8  }
 0x2f3   : > { %2706 = dma.vmem_to_hbm [thread:$0]  (%p2872_p5), %s2485_s11, 1024, %s2487_s17, %s2472_s16, %s2812_s29, %s2812_s29, %s2813_s30  }
 0x2f4 PF: > { %p2712_p4 = scmp.ge.s32.totalorder %s2810_s15, 2  ;;  %s2501_s4 = sand.u32 1, %s2798_s12  }
 0x2f5   : > { %s2502_s5 = scalar_lea.sflag [#allocation3], %s2501_s4 }
 0x2f6   : > { %p2709_p7 = pnand %p2712_p4, %p2876_p6 }
 0x2f8   : > { %p2710_p8 = pneg %p2709_p7 }
 0x2fa   : > { %2793 = dma.done.wait (%p2710_p8), %s2502_s5, 1024  }
 0x2fb   : > { %2795 = vsyncadd (%p2710_p8), %s2502_s5, 4294966272  ;;  %p13_p9 = scmp.ge.s32.totalorder %s2859_s18, 4   ;;  %s4374_s12 = smov %s2802_s13 }
 0x2fc   : > { %s4375_s13 = smov %s2806_s14  ;;  %s4376_s14 = smov %s2870_s21 }
 0x2fd   : > { %s4377_s15 = smov %s2859_s18  ;;  %15 = sbr.rel (!%p13_p9) target bundleno = 3 (0x3), region = 67 }
 0x302   :  { %2508 = vsyncpa [#allocation3], 1 }
 0x303   :  { %2510 = vsyncpa [#allocation3 + $0x1], 1 }

</bundles_post_ra>
